<compile_context>
chip_gen: v7x
topology: tpu7x:2x2x1
jax: 0.10.0
libtpu: 0.0.40
codegen_flags: <defaults>
</compile_context>

<pallas_src>
import functools

import numpy as np
import jax
import jax.numpy as jnp
from jax.experimental import pallas as pl
from jax.experimental.pallas import tpu as pltpu


_VMEM_LIMIT = 32 * 1024 * 1024


# ----------------------------------------------------------------------------
# Pallas kernels
# ----------------------------------------------------------------------------

def _mm_bn_kernel(a_ref, b_ref, s_ref, t_ref, o_ref, acc_ref, *, relu):
    """out = act((A @ B) * scale + shift); stored only on the last K step."""
    @pl.when(pl.program_id(2) == 0)
    def _():
        acc_ref[...] = jnp.zeros_like(acc_ref)

    acc_ref[...] += jnp.dot(a_ref[...], b_ref[...],
                            preferred_element_type=jnp.float32)

    @pl.when(pl.program_id(2) == pl.num_programs(2) - 1)
    def _():
        y = acc_ref[...] * s_ref[...] + t_ref[...]
        if relu:
            y = jnp.maximum(y, 0.0)
        o_ref[...] = y.astype(o_ref.dtype)


def _mm_bn_res_kernel(a_ref, b_ref, s_ref, t_ref, r_ref, o_ref, acc_ref, *, relu):
    """out = act((A @ B) * scale + shift + residual); residual add fused in epilogue."""
    @pl.when(pl.program_id(2) == 0)
    def _():
        acc_ref[...] = jnp.zeros_like(acc_ref)

    acc_ref[...] += jnp.dot(a_ref[...], b_ref[...],
                            preferred_element_type=jnp.float32)

    @pl.when(pl.program_id(2) == pl.num_programs(2) - 1)
    def _():
        y = acc_ref[...] * s_ref[...] + t_ref[...] + r_ref[...].astype(jnp.float32)
        if relu:
            y = jnp.maximum(y, 0.0)
        o_ref[...] = y.astype(o_ref.dtype)


def _maxpool9_kernel(*refs):
    """Elementwise max of 9 shifted views (3x3/stride-2 maxpool), row-tiled."""
    o_ref = refs[-1]
    m = refs[0][...]
    for r in refs[1:-1]:
        m = jnp.maximum(m, r[...])
    o_ref[...] = m


# ----------------------------------------------------------------------------
# Pallas wrappers
# ----------------------------------------------------------------------------

def _pick_divisor(dim, cands):
    for t in cands:
        if dim % t == 0:
            return t
    return dim


def matmul_fused(a, b, scale, shift, residual=None, relu=True,
                 out_dtype=jnp.bfloat16):
    """act((a @ b) * scale + shift [+ residual]) on the MXU.

    a: (M, K) bf16, b: (K, N) bf16, scale/shift: (1, N) f32,
    residual: optional (M, N) bf16 indexed by the same output tile."""
    M, K = a.shape
    Kb, N = b.shape
    assert K == Kb, (K, Kb)

    TM = M if M <= 256 else _pick_divisor(M, (256, 128, 64, 32, 16, 8))
    TN = N if N <= 1024 else _pick_divisor(N, (1024, 512, 256, 128))
    if K <= 2048:
        TK = K                                  # single K step, no padding needed
    else:
        TK = K
        for steps in range((K + 2047) // 2048, 65):
            if K % steps == 0 and (K // steps) % 128 == 0:
                TK = K // steps
                break
    # When M fits in one tile (deep layers), split N so megacore (v7x) still has
    # >= 2 parallel output tiles; extra A re-read is negligible at these sizes.
    if M // TM == 1 and N == TN and N % 256 == 0:
        TN = N // 2

    mb, nb, kb = M // TM, N // TN, K // TK

    # Lead the grid with the larger parallel axis.
    if nb >= mb:
        grid = (nb, mb, kb)
        a_map = lambda j, i, k: (i, k)
        b_map = lambda j, i, k: (k, j)
        o_map = lambda j, i, k: (i, j)
        v_map = lambda j, i, k: (0, j)
    else:
        grid = (mb, nb, kb)
        a_map = lambda i, j, k: (i, k)
        b_map = lambda i, j, k: (k, j)
        o_map = lambda i, j, k: (i, j)
        v_map = lambda i, j, k: (0, j)

    in_specs = [pl.BlockSpec((TM, TK), a_map),
                pl.BlockSpec((TK, TN), b_map),
                pl.BlockSpec((1, TN), v_map),
                pl.BlockSpec((1, TN), v_map)]
    inputs = [a, b, scale, shift]
    if residual is not None:
        kernel = functools.partial(_mm_bn_res_kernel, relu=relu)
        in_specs.append(pl.BlockSpec((TM, TN), o_map))
        inputs.append(residual)
    else:
        kernel = functools.partial(_mm_bn_kernel, relu=relu)

    return pl.pallas_call(
        kernel,
        out_shape=jax.ShapeDtypeStruct((M, N), out_dtype),
        grid_spec=pltpu.PrefetchScalarGridSpec(
            num_scalar_prefetch=0,
            grid=grid,
            in_specs=in_specs,
            out_specs=pl.BlockSpec((TM, TN), o_map),
            scratch_shapes=[pltpu.VMEM((TM, TN), jnp.float32)]),
        compiler_params=pltpu.CompilerParams(
            dimension_semantics=("parallel", "parallel", "arbitrary"),
            vmem_limit_bytes=_VMEM_LIMIT),
    )(*inputs)


def maxpool_3x3_s2_p1(x):
    """MaxPool2d(kernel=3, stride=2, padding=1), NHWC, via 9 shifted views."""
    N, H, W, C = x.shape
    xp = jnp.pad(x, ((0, 0), (1, 1), (1, 1), (0, 0)), constant_values=-jnp.inf)
    Ho = (H - 1) // 2 + 1
    Wo = (W - 1) // 2 + 1
    M = N * Ho * Wo
    views = [xp[:, ki:ki + (Ho - 1) * 2 + 1:2,
                kj:kj + (Wo - 1) * 2 + 1:2, :].reshape(M, C)
             for ki in range(3) for kj in range(3)]
    TR = 256 if (M > 256 and M % 256 == 0) else M
    out = pl.pallas_call(
        _maxpool9_kernel,
        out_shape=jax.ShapeDtypeStruct((M, C), x.dtype),
        grid_spec=pltpu.PrefetchScalarGridSpec(
            num_scalar_prefetch=0,
            grid=(M // TR,),
            in_specs=[pl.BlockSpec((TR, C), lambda i: (i, 0))] * 9,
            out_specs=pl.BlockSpec((TR, C), lambda i: (i, 0))),
        compiler_params=pltpu.CompilerParams(
            dimension_semantics=("parallel",),
            vmem_limit_bytes=_VMEM_LIMIT),
    )(*views)
    return out.reshape(N, Ho, Wo, C)


# ----------------------------------------------------------------------------
# Conv glue (im2col) + fused conv/BN/ReLU(/residual)
# ----------------------------------------------------------------------------

def _im2col(x, kh, kw, stride, padding):
    N, H, W, C = x.shape
    xp = jnp.pad(x, ((0, 0), (padding, padding), (padding, padding), (0, 0)))
    Ho = (H + 2 * padding - kh) // stride + 1
    Wo = (W + 2 * padding - kw) // stride + 1
    cols = [xp[:, ki:ki + (Ho - 1) * stride + 1:stride,
               kj:kj + (Wo - 1) * stride + 1:stride, :]
            for ki in range(kh) for kj in range(kw)]
    p = jnp.stack(cols, axis=3)                         # (N, Ho, Wo, kh*kw, C)
    return p.reshape(N * Ho * Wo, kh * kw * C), (N, Ho, Wo)


def conv_bn_act(x, w_mat, scale, shift, kh, kw, stride, padding,
                relu=True, residual2d=None):
    """Conv2d(bias=False) + folded BN (+ residual) (+ ReLU). NHWC bf16 in/out."""
    if kh == 1 and kw == 1:
        xs = x if stride == 1 else x[:, ::stride, ::stride, :]
        N, Ho, Wo = xs.shape[:3]
        a = xs.reshape(N * Ho * Wo, xs.shape[-1])
    else:
        a, (N, Ho, Wo) = _im2col(x, kh, kw, stride, padding)
    y = matmul_fused(a, w_mat, scale, shift, residual=residual2d, relu=relu)
    return y.reshape(N, Ho, Wo, -1)


# ----------------------------------------------------------------------------
# Deterministic parameter construction (synthetic; no checkpoint loading)
# ----------------------------------------------------------------------------

class ParamGen:
    """Deterministic synthetic params, pre-reshaped to matmul (K, N) bf16 layout,
    with BatchNorm folded to per-channel (scale, shift) f32."""

    def __init__(self, seed=0):
        self.rng = np.random.default_rng(seed)

    def _normal(self, shape, s):
        return self.rng.standard_normal(shape).astype(np.float32) * s

    def conv_mat(self, cout, cin, k):
        w = self._normal((cout, cin, k, k), 0.5 / np.sqrt(cin * k * k))
        m = np.transpose(w, (2, 3, 1, 0)).reshape(k * k * cin, cout)
        return jnp.asarray(m, dtype=jnp.bfloat16)

    def deconv_mat(self, cin, cout, k):
        w = self._normal((cin, cout, k, k), 0.5 / np.sqrt(cin))
        return jnp.asarray(w.reshape(cin, cout * k * k), dtype=jnp.bfloat16)

    def bn(self, c, extra_bias=None, repeat=1):
        gamma = 1.0 + 0.1 * self.rng.standard_normal(c).astype(np.float32)
        beta = 0.1 * self.rng.standard_normal(c).astype(np.float32)
        mean = 0.1 * self.rng.standard_normal(c).astype(np.float32)
        var = 1.0 + 0.1 * np.abs(self.rng.standard_normal(c).astype(np.float32))
        scale = gamma / np.sqrt(var + 1e-5)
        shift = beta - mean * scale
        if extra_bias is not None:
            shift = shift + extra_bias * scale          # conv/deconv bias folded in
        if repeat > 1:
            scale = np.repeat(scale, repeat)
            shift = np.repeat(shift, repeat)
        return (jnp.asarray(scale.reshape(1, -1)),
                jnp.asarray(shift.reshape(1, -1)))


def build_params(seed=0):
    pg = ParamGen(seed)
    params = {"stem": dict(zip(("w", "s", "t"),
                               (pg.conv_mat(64, 3, 7),) + pg.bn(64)))}
    inplanes = 64
    layers = []
    # ResNet-152: Bottleneck blocks [3, 8, 36, 3]
    for planes, blocks, stride in [(64, 3, 1), (128, 8, 2), (256, 36, 2), (512, 3, 2)]:
        blist = []
        for bidx in range(blocks):
            blk = {
                "c1": dict(zip(("w", "s", "t"),
                               (pg.conv_mat(planes, inplanes, 1),) + pg.bn(planes))),
                "c2": dict(zip(("w", "s", "t"),
                               (pg.conv_mat(planes, planes, 3),) + pg.bn(planes))),
                "c3": dict(zip(("w", "s", "t"),
                               (pg.conv_mat(planes * 4, planes, 1),) + pg.bn(planes * 4))),
            }
            s = stride if bidx == 0 else 1
            if s != 1 or inplanes != planes * 4:
                blk["down"] = dict(zip(("w", "s", "t"),
                                       (pg.conv_mat(planes * 4, inplanes, 1),)
                                       + pg.bn(planes * 4)))
            blist.append(blk)
            inplanes = planes * 4
        layers.append(blist)
    params["layers"] = layers

    stages = []
    for i in range(5):
        cin = 2048 // (2 ** i)
        cout = 2048 // (2 ** (i + 1))
        w = pg.deconv_mat(cin, cout, 2)                 # (cin, cout*4) columns
        bias = pg._normal((cout,), 0.1)                 # deconv bias -> folded into BN
        s, t = pg.bn(cout, extra_bias=bias, repeat=4)   # per-(cout, tap) columns
        stages.append({"w": w, "s": s, "t": t})
    params["mask"] = {
        "stages": stages,
        "final_w": jnp.asarray(pg._normal((64, 1), 0.5 / np.sqrt(64))),
        "final_b": jnp.asarray(pg._normal((1,), 0.1)),
    }
    return params


# ----------------------------------------------------------------------------
# Forward pass (per-stage jit: identical bottlenecks share one compilation)
# ----------------------------------------------------------------------------

LAYER_STRIDES = (1, 2, 2, 2)
MASK_PADS = (0, 0, 0, 0, 3)


@jax.jit
def stem_forward(x_nchw, stem):
    x = jnp.transpose(x_nchw, (0, 2, 3, 1)).astype(jnp.bfloat16)   # NCHW -> NHWC
    x = conv_bn_act(x, stem["w"], stem["s"], stem["t"], 7, 7, 2, 3, relu=True)
    return maxpool_3x3_s2_p1(x)


@functools.partial(jax.jit, static_argnums=(2,))
def bottleneck_forward(x, blk, stride):
    if "down" in blk:
        idn = conv_bn_act(x, blk["down"]["w"], blk["down"]["s"], blk["down"]["t"],
                          1, 1, stride, 0, relu=False)
    else:
        idn = x
    out = conv_bn_act(x, blk["c1"]["w"], blk["c1"]["s"], blk["c1"]["t"],
                      1, 1, 1, 0, relu=True)
    out = conv_bn_act(out, blk["c2"]["w"], blk["c2"]["s"], blk["c2"]["t"],
                      3, 3, stride, 1, relu=True)
    # conv3 + bn3 + residual add + ReLU fused in a single matmul epilogue.
    out = conv_bn_act(out, blk["c3"]["w"], blk["c3"]["s"], blk["c3"]["t"],
                      1, 1, 1, 0, relu=True,
                      residual2d=idn.reshape(-1, idn.shape[-1]))
    return out


@jax.jit
def mask_forward(x, mp):
    for st, pad in zip(mp["stages"], MASK_PADS):
        N, H, W, Cin = x.shape
        # ConvTranspose(k=2, s=2) == matmul to (cout*4) columns + pixel shuffle;
        # BN + ReLU fused into the matmul epilogue (applied per (cout, tap) column,
        # which commutes with the shuffle and the border crop).
        y2d = matmul_fused(x.reshape(N * H * W, Cin), st["w"], st["s"], st["t"],
                           relu=True)
        Cout = y2d.shape[-1] // 4
        y = y2d.reshape(N, H, W, Cout, 2, 2)
        y = jnp.transpose(y, (0, 1, 4, 2, 5, 3)).reshape(N, 2 * H, 2 * W, Cout)
        if pad:
            y = y[:, pad:2 * H - pad, pad:2 * W - pad, :]
        x = y
    # Final ConvTranspose2d(64, 1, kernel=1) + Sigmoid: a 1-wide output column can
    # never be lane-dense, so this tiny matvec stays in plain XLA (f32).
    N, H, W, Cin = x.shape
    y = jax.nn.sigmoid(x.reshape(-1, Cin).astype(jnp.float32) @ mp["final_w"]
                       + mp["final_b"])
    return jnp.transpose(y.reshape(N, H, W, 1), (0, 3, 1, 2))      # NHWC -> NCHW


def resnet_model_forward(x_nchw, params):
    """ResNetModel(use_lidar=False).forward — NCHW image in, NCHW mask out."""
    x = stem_forward(x_nchw, params["stem"])
    for layer, lstride in zip(params["layers"], LAYER_STRIDES):
        for bidx, blk in enumerate(layer):
            x = bottleneck_forward(x, blk, lstride if bidx == 0 else 1)
    return mask_forward(x, params["mask"])


# ----------------------------------------------------------------------------

if __name__ == "__main__":
    key = jax.random.PRNGKey(0)
    # Small RGB input: (batch=2, 3, 64, 64) -> layer4 features (2, 2, 2, 2048) NHWC
    # -> mask output (2, 1, 58, 58)
    x = jax.random.normal(key, (2, 3, 64, 64), dtype=jnp.float32)

    params = build_params(seed=0)
    out = resnet_model_forward(x, params)
    out = jax.block_until_ready(out)

    assert out.shape == (2, 1, 58, 58), out.shape
    assert bool(jnp.isfinite(out).all())
    assert bool((out >= 0.0).all()) and bool((out <= 1.0).all())
    print("KERNEL_OK")
</pallas_src>

<mosaic_0001>
module attributes {stable_mosaic.version = 11 : i64} {
  func.func @_mm_bn_kernel(%arg0: i32, %arg1: i32, %arg2: i32, %arg3: memref<256x147xbf16, #tpu.memory_space<vmem>>, %arg4: memref<147x64xbf16, #tpu.memory_space<vmem>>, %arg5: memref<1x64xf32, #tpu.memory_space<vmem>>, %arg6: memref<1x64xf32, #tpu.memory_space<vmem>>, %arg7: memref<256x64xbf16, #tpu.memory_space<vmem>>, %arg8: memref<256x64xf32, #tpu.memory_space<vmem>>) attributes {dimension_semantics = [#tpu.dimension_semantics<parallel>, #tpu.dimension_semantics<parallel>, #tpu.dimension_semantics<arbitrary>], iteration_bounds = array<i64: 8, 1, 1>, scalar_prefetch = 0 : i64, scratch_operands = 1 : i64, tpu.core_type = #tpu.core_type<tc>, window_params = [{transform_indices = @transform_0, window_bounds = array<i64: 256, 147>}, {transform_indices = @transform_1, window_bounds = array<i64: 147, 64>}, {transform_indices = @transform_2, window_bounds = array<i64: 1, 64>}, {transform_indices = @transform_3, window_bounds = array<i64: 1, 64>}, {transform_indices = @transform_4, window_bounds = array<i64: 256, 64>}]} {
    %c0_i32 = arith.constant 0 : i32
    %0 = arith.cmpi eq, %arg2, %c0_i32 : i32
    %1 = arith.extui %0 : i1 to i32
    %c0_i32_0 = arith.constant 0 : i32
    %2 = arith.cmpi ne, %1, %c0_i32_0 : i32
    scf.if %2 {
      %cst_10 = arith.constant 0.000000e+00 : f32
      %12 = vector.broadcast %cst_10 : f32 to vector<256x64xf32>
      %c0_11 = arith.constant 0 : index
      %c0_12 = arith.constant 0 : index
      %13 = vector.load %arg8[%c0_11, %c0_12] : memref<256x64xf32, #tpu.memory_space<vmem>>, vector<256x64xf32>
      tpu.vector_store %arg8[%c0_11, %c0_12], %12 {strides = array<i32>} : memref<256x64xf32, #tpu.memory_space<vmem>>, vector<256x64xf32>,
    } else {
    }
    %c0 = arith.constant 0 : index
    %c0_1 = arith.constant 0 : index
    %3 = vector.load %arg8[%c0, %c0_1] : memref<256x64xf32, #tpu.memory_space<vmem>>, vector<256x64xf32>
    %c0_2 = arith.constant 0 : index
    %c0_3 = arith.constant 0 : index
    %4 = vector.load %arg3[%c0_2, %c0_3] : memref<256x147xbf16, #tpu.memory_space<vmem>>, vector<256x147xbf16>
    %c0_4 = arith.constant 0 : index
    %c0_5 = arith.constant 0 : index
    %5 = vector.load %arg4[%c0_4, %c0_5] : memref<147x64xbf16, #tpu.memory_space<vmem>>, vector<147x64xbf16>
    %cst = arith.constant dense<0.000000e+00> : vector<256x64xf32>
    %6 = tpu.matmul %4, %5, %cst {dimension_numbers = #tpu.dot_dimension_numbers<[1], [0], [0], [1], [0, 0, 1, 1], [], []>} : vector<256x147xbf16>, vector<147x64xbf16>, vector<256x64xf32> -> vector<256x64xf32>
    %7 = arith.addf %3, %6 : vector<256x64xf32>
    %c0_6 = arith.constant 0 : index
    %c0_7 = arith.constant 0 : index
    %8 = vector.load %arg8[%c0_6, %c0_7] : memref<256x64xf32, #tpu.memory_space<vmem>>, vector<256x64xf32>
    tpu.vector_store %arg8[%c0_6, %c0_7], %7 {strides = array<i32>} : memref<256x64xf32, #tpu.memory_space<vmem>>, vector<256x64xf32>,
    %c0_i32_8 = arith.constant 0 : i32
    %9 = arith.cmpi eq, %arg2, %c0_i32_8 : i32
    %10 = arith.extui %9 : i1 to i32
    %c0_i32_9 = arith.constant 0 : i32
    %11 = arith.cmpi ne, %10, %c0_i32_9 : i32
    scf.if %11 {
      %c0_10 = arith.constant 0 : index
      %c0_11 = arith.constant 0 : index
      %12 = vector.load %arg8[%c0_10, %c0_11] : memref<256x64xf32, #tpu.memory_space<vmem>>, vector<256x64xf32>
      %c0_12 = arith.constant 0 : index
      %c0_13 = arith.constant 0 : index
      %13 = vector.load %arg5[%c0_12, %c0_13] : memref<1x64xf32, #tpu.memory_space<vmem>>, vector<1x64xf32>
      %14 = vector.broadcast %13 : vector<1x64xf32> to vector<256x64xf32>
      %15 = arith.mulf %12, %14 : vector<256x64xf32>
      %c0_14 = arith.constant 0 : index
      %c0_15 = arith.constant 0 : index
      %16 = vector.load %arg6[%c0_14, %c0_15] : memref<1x64xf32, #tpu.memory_space<vmem>>, vector<1x64xf32>
      %17 = vector.broadcast %16 : vector<1x64xf32> to vector<256x64xf32>
      %18 = arith.addf %15, %17 : vector<256x64xf32>
      %cst_16 = arith.constant 0.000000e+00 : f32
      %19 = vector.broadcast %cst_16 : f32 to vector<256x64xf32>
      %20 = arith.maximumf %18, %19 : vector<256x64xf32>
      %21 = arith.truncf %20 : vector<256x64xf32> to vector<256x64xbf16>
      %c0_17 = arith.constant 0 : index
      %c0_18 = arith.constant 0 : index
      %22 = vector.load %arg7[%c0_17, %c0_18] : memref<256x64xbf16, #tpu.memory_space<vmem>>, vector<256x64xbf16>
      tpu.vector_store %arg7[%c0_17, %c0_18], %21 {strides = array<i32>} : memref<256x64xbf16, #tpu.memory_space<vmem>>, vector<256x64xbf16>,
    } else {
    }
    return
  }
  func.func @transform_0(%arg0: i32, %arg1: i32, %arg2: i32) -> (i32, i32) {
    %c0_i32 = arith.constant 0 : i32
    return %arg0, %arg2 : i32, i32
  }
  func.func @transform_1(%arg0: i32, %arg1: i32, %arg2: i32) -> (i32, i32) {
    %c0_i32 = arith.constant 0 : i32
    return %arg2, %arg1 : i32, i32
  }
  func.func @transform_2(%arg0: i32, %arg1: i32, %arg2: i32) -> (i32, i32) {
    %c0_i32 = arith.constant 0 : i32
    %c0_i32_0 = arith.constant 0 : i32
    return %c0_i32, %arg1 : i32, i32
  }
  func.func @transform_3(%arg0: i32, %arg1: i32, %arg2: i32) -> (i32, i32) {
    %c0_i32 = arith.constant 0 : i32
    %c0_i32_0 = arith.constant 0 : i32
    return %c0_i32, %arg1 : i32, i32
  }
  func.func @transform_4(%arg0: i32, %arg1: i32, %arg2: i32) -> (i32, i32) {
    %c0_i32 = arith.constant 0 : i32
    return %arg0, %arg1 : i32, i32
  }
}

module attributes {stable_mosaic.version = 11 : i64} {
  func.func @_maxpool9_kernel(%arg0: i32, %arg1: memref<256x64xbf16, #tpu.memory_space<vmem>>, %arg2: memref<256x64xbf16, #tpu.memory_space<vmem>>, %arg3: memref<256x64xbf16, #tpu.memory_space<vmem>>, %arg4: memref<256x64xbf16, #tpu.memory_space<vmem>>, %arg5: memref<256x64xbf16, #tpu.memory_space<vmem>>, %arg6: memref<256x64xbf16, #tpu.memory_space<vmem>>, %arg7: memref<256x64xbf16, #tpu.memory_space<vmem>>, %arg8: memref<256x64xbf16, #tpu.memory_space<vmem>>, %arg9: memref<256x64xbf16, #tpu.memory_space<vmem>>, %arg10: memref<256x64xbf16, #tpu.memory_space<vmem>>) attributes {dimension_semantics = [#tpu.dimension_semantics<parallel>], iteration_bounds = array<i64: 2>, scalar_prefetch = 0 : i64, scratch_operands = 0 : i64, tpu.core_type = #tpu.core_type<tc>, window_params = [{transform_indices = @transform_0, window_bounds = array<i64: 256, 64>}, {transform_indices = @transform_1, window_bounds = array<i64: 256, 64>}, {transform_indices = @transform_2, window_bounds = array<i64: 256, 64>}, {transform_indices = @transform_3, window_bounds = array<i64: 256, 64>}, {transform_indices = @transform_4, window_bounds = array<i64: 256, 64>}, {transform_indices = @transform_5, window_bounds = array<i64: 256, 64>}, {transform_indices = @transform_6, window_bounds = array<i64: 256, 64>}, {transform_indices = @transform_7, window_bounds = array<i64: 256, 64>}, {transform_indices = @transform_8, window_bounds = array<i64: 256, 64>}, {transform_indices = @transform_9, window_bounds = array<i64: 256, 64>}]} {
    %c0 = arith.constant 0 : index
    %c0_0 = arith.constant 0 : index
    %0 = vector.load %arg1[%c0, %c0_0] : memref<256x64xbf16, #tpu.memory_space<vmem>>, vector<256x64xbf16>
    %c0_1 = arith.constant 0 : index
    %c0_2 = arith.constant 0 : index
    %1 = vector.load %arg2[%c0_1, %c0_2] : memref<256x64xbf16, #tpu.memory_space<vmem>>, vector<256x64xbf16>
    %2 = arith.maximumf %0, %1 : vector<256x64xbf16>
    %c0_3 = arith.constant 0 : index
    %c0_4 = arith.constant 0 : index
    %3 = vector.load %arg3[%c0_3, %c0_4] : memref<256x64xbf16, #tpu.memory_space<vmem>>, vector<256x64xbf16>
    %4 = arith.maximumf %2, %3 : vector<256x64xbf16>
    %c0_5 = arith.constant 0 : index
    %c0_6 = arith.constant 0 : index
    %5 = vector.load %arg4[%c0_5, %c0_6] : memref<256x64xbf16, #tpu.memory_space<vmem>>, vector<256x64xbf16>
    %6 = arith.maximumf %4, %5 : vector<256x64xbf16>
    %c0_7 = arith.constant 0 : index
    %c0_8 = arith.constant 0 : index
    %7 = vector.load %arg5[%c0_7, %c0_8] : memref<256x64xbf16, #tpu.memory_space<vmem>>, vector<256x64xbf16>
    %8 = arith.maximumf %6, %7 : vector<256x64xbf16>
    %c0_9 = arith.constant 0 : index
    %c0_10 = arith.constant 0 : index
    %9 = vector.load %arg6[%c0_9, %c0_10] : memref<256x64xbf16, #tpu.memory_space<vmem>>, vector<256x64xbf16>
    %10 = arith.maximumf %8, %9 : vector<256x64xbf16>
    %c0_11 = arith.constant 0 : index
    %c0_12 = arith.constant 0 : index
    %11 = vector.load %arg7[%c0_11, %c0_12] : memref<256x64xbf16, #tpu.memory_space<vmem>>, vector<256x64xbf16>
    %12 = arith.maximumf %10, %11 : vector<256x64xbf16>
    %c0_13 = arith.constant 0 : index
    %c0_14 = arith.constant 0 : index
    %13 = vector.load %arg8[%c0_13, %c0_14] : memref<256x64xbf16, #tpu.memory_space<vmem>>, vector<256x64xbf16>
    %14 = arith.maximumf %12, %13 : vector<256x64xbf16>
    %c0_15 = arith.constant 0 : index
    %c0_16 = arith.constant 0 : index
    %15 = vector.load %arg9[%c0_15, %c0_16] : memref<256x64xbf16, #tpu.memory_space<vmem>>, vector<256x64xbf16>
    %16 = arith.maximumf %14, %15 : vector<256x64xbf16>
    %c0_17 = arith.constant 0 : index
    %c0_18 = arith.constant 0 : index
    %17 = vector.load %arg10[%c0_17, %c0_18] : memref<256x64xbf16, #tpu.memory_space<vmem>>, vector<256x64xbf16>
    tpu.vector_store %arg10[%c0_17, %c0_18], %16 {strides = array<i32>} : memref<256x64xbf16, #tpu.memory_space<vmem>>, vector<256x64xbf16>,
    return
  }
  func.func @transform_0(%arg0: i32) -> (i32, i32) {
    %c0_i32 = arith.constant 0 : i32
    %c0_i32_0 = arith.constant 0 : i32
    return %arg0, %c0_i32 : i32, i32
  }
  func.func @transform_1(%arg0: i32) -> (i32, i32) {
    %c0_i32 = arith.constant 0 : i32
    %c0_i32_0 = arith.constant 0 : i32
    return %arg0, %c0_i32 : i32, i32
  }
  func.func @transform_2(%arg0: i32) -> (i32, i32) {
    %c0_i32 = arith.constant 0 : i32
    %c0_i32_0 = arith.constant 0 : i32
    return %arg0, %c0_i32 : i32, i32
  }
  func.func @transform_3(%arg0: i32) -> (i32, i32) {
    %c0_i32 = arith.constant 0 : i32
    %c0_i32_0 = arith.constant 0 : i32
    return %arg0, %c0_i32 : i32, i32
  }
  func.func @transform_4(%arg0: i32) -> (i32, i32) {
    %c0_i32 = arith.constant 0 : i32
    %c0_i32_0 = arith.constant 0 : i32
    return %arg0, %c0_i32 : i32, i32
  }
  func.func @transform_5(%arg0: i32) -> (i32, i32) {
    %c0_i32 = arith.constant 0 : i32
    %c0_i32_0 = arith.constant 0 : i32
    return %arg0, %c0_i32 : i32, i32
  }
  func.func @transform_6(%arg0: i32) -> (i32, i32) {
    %c0_i32 = arith.constant 0 : i32
    %c0_i32_0 = arith.constant 0 : i32
    return %arg0, %c0_i32 : i32, i32
  }
  func.func @transform_7(%arg0: i32) -> (i32, i32) {
    %c0_i32 = arith.constant 0 : i32
    %c0_i32_0 = arith.constant 0 : i32
    return %arg0, %c0_i32 : i32, i32
  }
  func.func @transform_8(%arg0: i32) -> (i32, i32) {
    %c0_i32 = arith.constant 0 : i32
    %c0_i32_0 = arith.constant 0 : i32
    return %arg0, %c0_i32 : i32, i32
  }
  func.func @transform_9(%arg0: i32) -> (i32, i32) {
    %c0_i32 = arith.constant 0 : i32
    %c0_i32_0 = arith.constant 0 : i32
    return %arg0, %c0_i32 : i32, i32
  }
}

</mosaic_0001>

<bundles_post_ra>
// kernel: stem_forward.2
= control target key start
LH: loop header
LB: loop body
LE: loop exit
PB: predicated region body
PF: predicated region fallthrough
CT: control target
= control target key end

     0   :  { %s1641_s15 = smov 0   ;;  %s1643_s16 = smov 0   ;;  %s1984_s0 = inlined_call_operand.vmem [shape: bf16[2048,147], index: 0, kind: input, shape index: {}]   ;;  %s1985_s1 = inlined_call_operand.vmem [shape: bf16[147,64], index: 1, kind: input, shape index: {}]   ;;  %s1986_s2 = inlined_call_operand.vmem [shape: f32[1,64], index: 2, kind: input, shape index: {}]   ;;  %s1987_s3 = inlined_call_operand.vmem [shape: f32[1,64], index: 3, kind: input, shape index: {}]   ;;  %s1988_s4 = inlined_call_operand.vmem [shape: bf16[2048,64], index: 4, kind: output, shape index: {}]  }
   0x1   :  { %s1645_s17 = smov 0  }
   0x2 LB: > { %s33_s18 = sadd.s32 1, %s1607_s16  ;;  %p1351_p0 = scmp.ge.s32.totalorder %s1611_s17, 1  ;;  %s1611_s17 = sphi %s1645_s17, %s14_s17   ;;  %s1607_s16 = sphi %s1643_s16, %s1990_s16   ;;  %s1603_s15 = sphi %s1641_s15, %s1989_s15  }
   0x3   : > { %p35_p1 = scmp.ge.s32.totalorder %s33_s18, 8  ;;  %p224_p2 = scmp.lt.s32.totalorder %s1611_s17, 9 }
   0x5   : > { %s1992_s18 = smov (%p35_p1, %s33_s18), 0  ;;  %p225_p3 = pnand %p1351_p0, %p224_p2 }
   0x6   : > { %v1531_v0 = vld [vmem:[%s1985_s1] sm:$0xff] (!%p225_p3)   ;;  %v1613_v1 = vmov (!%p225_p3), 0   ;;  %v1532_v2 = vld [vmem:[%s1985_s1 + $0x8] sm:$0xff] (!%p225_p3)   ;;  %v1533_v3 = vld [vmem:[%s1985_s1 + $0x10] sm:$0xff] (!%p225_p3)   ;;  %s1352_s25 = sshll.u32 (!%p225_p3), %s1603_s15, 5  ;;  %vm313_vm0 = vcmask (!%p225_p3), 523264  }
   0x7   : > { %228 = sbr.rel (%p225_p3) target bundleno = 338 (0x152), region = 36  ;;  %686 = vmatprep.subr.bf16.mxu0 (!%p225_p3), %v1613_v1  ;;  %1484 = vmatprep.subr.bf16.mxu1 (!%p225_p3), %v1613_v1  ;;  %p274_p4 = scmp.lt.s32.totalorder (!%p225_p3), %s1352_s25, 255  ;;  %v1534_v4 = vld [vmem:[%s1985_s1 + $0x18] sm:$0xff] (!%p225_p3)   ;;  %v1614_v5 = vmov (!%p225_p3), 0.0   ;;  %v1535_v6 = vld [vmem:[%s1985_s1 + $0x20] sm:$0xff] (!%p225_p3)   ;;  %vm630_vm1 = vcmask (!%p225_p3), 154624  }
   0x8   : > { %687 = vmatpush1.bf16.msra.mxu0 (!%p225_p3), %v1531_v0  ;;  %1494 = vmatpush1.bf16.msra.mxu1 (!%p225_p3), %v1531_v0  ;;  %314 = vst.msk [vmem:[#allocation2] sm:$0xff] (!%p225_p3), %vm313_vm0, %v1614_v5  ;;  %315 = vst.msk [vmem:[#allocation2 + $0x8] sm:$0xff] (!%p225_p3), %vm313_vm0, %v1614_v5  ;;  %v1536_v9 = vld [vmem:[%s1985_s1 + $0x28] sm:$0xff] (!%p225_p3)   ;;  %v1537_v10 = vld [vmem:[%s1985_s1 + $0x30] sm:$0xff] (!%p225_p3)   ;;  %vm679_vm2 = vcmask (!%p225_p3), 1040384   ;;  %vm680_vm3 = vcmask (!%p225_p3), 1041408  }
   0x9   : > { %688 = vmatprep.subr.bf16.mxu0 (!%p225_p3), %v1613_v1  ;;  %1485 = vmatprep.subr.bf16.mxu1 (!%p225_p3), %v1613_v1  ;;  %316 = vst.msk [vmem:[#allocation2 + $0x10] sm:$0xff] (!%p225_p3), %vm313_vm0, %v1614_v5  ;;  %317 = vst.msk [vmem:[#allocation2 + $0x18] sm:$0xff] (!%p225_p3), %vm313_vm0, %v1614_v5  ;;  %v1538_v11 = vld [vmem:[%s1985_s1 + $0x38] sm:$0xff] (!%p225_p3)   ;;  %v1615_v12 = vmov (!%p225_p3), 65535   ;;  %v1539_v14 = vld [vmem:[%s1985_s1 + $0x40] sm:$0xff] (!%p225_p3)   ;;  %vm1185_vm4 = vcmask (!%p225_p3), 519168  }
   0xa   : > { %318 = vst.msk [vmem:[#allocation2 + $0x20] sm:$0xff] (!%p225_p3), %vm313_vm0, %v1614_v5  ;;  %319 = vst.msk [vmem:[#allocation2 + $0x28] sm:$0xff] (!%p225_p3), %vm313_vm0, %v1614_v5  ;;  %v681_v13 = vsel (!%p225_p3), %vm679_vm2, 4294967295, %v1615_v12  ;;  %v1540_v15 = vld [vmem:[%s1985_s1 + $0x48] ss:$0 sps:$4 sm:$0x33] (!%p225_p3)  }
   0xb   : > { %320 = vst.msk [vmem:[#allocation2 + $0x30] sm:$0xff] (!%p225_p3), %vm313_vm0, %v1614_v5  ;;  %321 = vst.msk [vmem:[#allocation2 + $0x38] sm:$0xff] (!%p225_p3), %vm313_vm0, %v1614_v5  ;;  %v682_v16 = vsel (!%p225_p3), %vm680_vm3, %v681_v13, 0  ;;  %v1811_v12 = vld [vmem:[%s1987_s3] ss:$0 sm:$0xff] (!%p225_p3) }
   0xc   : > { %689 = vmatpush1.bf16.msra.mxu0 (!%p225_p3), %v1532_v2  ;;  %1495 = vmatpush1.bf16.msra.mxu1 (!%p225_p3), %v1532_v2  ;;  %322 = vst.msk [vmem:[#allocation2 + $0x40] sm:$0xff] (!%p225_p3), %vm313_vm0, %v1614_v5  ;;  %323 = vst.msk [vmem:[#allocation2 + $0x48] sm:$0xff] (!%p225_p3), %vm313_vm0, %v1614_v5  ;;  %v684_v17 = vand.u32 (!%p225_p3), %v1540_v15, %v682_v16  ;;  %v1806_v2 = vld [vmem:[%s1986_s2] ss:$0 sm:$0xff] (!%p225_p3) }
   0xd   : > { %690 = vmatprep.subr.bf16.mxu0 (!%p225_p3), %v1613_v1  ;;  %1486 = vmatprep.subr.bf16.mxu1 (!%p225_p3), %v1613_v1  ;;  %324 = vst.msk [vmem:[#allocation2 + $0x50] sm:$0xff] (!%p225_p3), %vm313_vm0, %v1614_v5  ;;  %325 = vst.msk [vmem:[#allocation2 + $0x58] sm:$0xff] (!%p225_p3), %vm313_vm0, %v1614_v5 }
   0xe   : > { %s1994_s25 = smov (!%p274_p4, %s1352_s25), 255  ;;  %326 = vst.msk [vmem:[#allocation2 + $0x60] sm:$0xff] %vm313_vm0, %v1614_v5  ;;  %327 = vst.msk [vmem:[#allocation2 + $0x68] sm:$0xff] %vm313_vm0, %v1614_v5 }
   0xf   : > { %s1451_s28 = sshll.u32 %s1994_s25, 3  ;;  %328 = vst.msk [vmem:[#allocation2 + $0x70] sm:$0xff] %vm313_vm0, %v1614_v5  ;;  %329 = vst.msk [vmem:[#allocation2 + $0x78] sm:$0xff] %vm313_vm0, %v1614_v5  ;;  %v346_v48 = vld [vmem:[#allocation2] sm:$0xff]  ;;  %v347_v52 = vld [vmem:[#allocation2 + $0x8] sm:$0xff]  ;;  %s1356_s26 = sshll.u32 %s1994_s25, 2 }
  0x10   : > { %691 = vmatpush1.bf16.msra.mxu0 %v1533_v3  ;;  %1496 = vmatpush1.bf16.msra.mxu1 %v1533_v3  ;;  %330 = vst.msk [vmem:[#allocation2 + $0x80] sm:$0xff] %vm313_vm0, %v1614_v5  ;;  %331 = vst.msk [vmem:[#allocation2 + $0x88] sm:$0xff] %vm313_vm0, %v1614_v5  ;;  %s1719_s5 = scalar_lea.vmem %s1984_s0, %s1451_s28  ;;  %v348_v0 = vld [vmem:[#allocation2 + $0x10] sm:$0xff]  ;;  %s1829_s28 = scalar_lea.vmem %s1988_s4, %s1356_s26 }
  0x11   : > { %692 = vmatprep.subr.bf16.mxu0 %v1613_v1  ;;  %1487 = vmatprep.subr.bf16.mxu1 %v1613_v1  ;;  %332 = vst.msk [vmem:[#allocation2 + $0x90] sm:$0xff] %vm313_vm0, %v1614_v5  ;;  %333 = vst.msk [vmem:[#allocation2 + $0x98] sm:$0xff] %vm313_vm0, %v1614_v5  ;;  %v1543_v7 = vld [vmem:[%s1719_s5 + $0x4] ss:$8 sps:$4 sm:$0xff]   ;;  %v1541_v18 = vld [vmem:[%s1719_s5] ss:$8 sps:$4 sm:$0xff]  }
  0x12   : > { %334 = vst.msk [vmem:[#allocation2 + $0xa0] sm:$0xff] %vm313_vm0, %v1614_v5  ;;  %335 = vst.msk [vmem:[#allocation2 + $0xa8] sm:$0xff] %vm313_vm0, %v1614_v5  ;;  %v1546_v8 = vld [vmem:[%s1719_s5 + $0x84] ss:$8 sps:$4 sm:$0xff]   ;;  %1399 = vmatprep.mubr.msk.bf16.mxu0 %vm630_vm1, %v1543_v7  ;;  %v1544_v19 = vld [vmem:[%s1719_s5 + $0x80] ss:$8 sps:$4 sm:$0xff]  }
  0x13   : > { %336 = vst.msk [vmem:[#allocation2 + $0xb0] sm:$0xff] %vm313_vm0, %v1614_v5  ;;  %337 = vst.msk [vmem:[#allocation2 + $0xb8] sm:$0xff] %vm313_vm0, %v1614_v5  ;;  %1407 = vmatprep.mubr.msk.bf16.mxu1 %vm630_vm1, %v1546_v8  ;;  %v1547_v20 = vld [vmem:[%s1719_s5 + $0x14] ss:$8 sps:$4 sm:$0xff]   ;;  %v1551_v22 = vld [vmem:[%s1719_s5 + $0x10] ss:$8 sps:$4 sm:$0xff]  }
  0x14   : > { %338 = vst.msk [vmem:[#allocation2 + $0xc0] sm:$0xff] %vm313_vm0, %v1614_v5  ;;  %339 = vst.msk [vmem:[#allocation2 + $0xc8] sm:$0xff] %vm313_vm0, %v1614_v5  ;;  %693 = vmatpush1.bf16.msra.mxu0 %v1534_v4  ;;  %1497 = vmatpush1.bf16.msra.mxu1 %v1534_v4  ;;  %v1549_v21 = vld [vmem:[%s1719_s5 + $0x94] ss:$8 sps:$4 sm:$0xff]   ;;  %v1552_v23 = vld [vmem:[%s1719_s5 + $0x90] ss:$8 sps:$4 sm:$0xff]  }
  0x15   : > { %340 = vst.msk [vmem:[#allocation2 + $0xd0] sm:$0xff] %vm313_vm0, %v1614_v5  ;;  %341 = vst.msk [vmem:[#allocation2 + $0xd8] sm:$0xff] %vm313_vm0, %v1614_v5  ;;  %694 = vmatprep.subr.bf16.mxu0 %v1613_v1  ;;  %1488 = vmatprep.subr.bf16.mxu1 %v1613_v1  ;;  %v1553_v24 = vld [vmem:[%s1719_s5 + $0x24] ss:$8 sps:$4 sm:$0xff]   ;;  %v1557_v26 = vld [vmem:[%s1719_s5 + $0x20] ss:$8 sps:$4 sm:$0xff]  }
  0x16   : > { %342 = vst.msk [vmem:[#allocation2 + $0xe0] sm:$0xff] %vm313_vm0, %v1614_v5  ;;  %343 = vst.msk [vmem:[#allocation2 + $0xe8] sm:$0xff] %vm313_vm0, %v1614_v5  ;;  %v1555_v25 = vld [vmem:[%s1719_s5 + $0xa4] ss:$8 sps:$4 sm:$0xff]   ;;  %v1558_v27 = vld [vmem:[%s1719_s5 + $0xa0] ss:$8 sps:$4 sm:$0xff]  }
  0x17   : > { %344 = vst.msk [vmem:[#allocation2 + $0xf0] sm:$0xff] %vm313_vm0, %v1614_v5  ;;  %345 = vst.msk [vmem:[#allocation2 + $0xf8] sm:$0xff] %vm313_vm0, %v1614_v5  ;;  %v1559_v28 = vld [vmem:[%s1719_s5 + $0x34] ss:$8 sps:$4 sm:$0xff]   ;;  %v1563_v30 = vld [vmem:[%s1719_s5 + $0x30] ss:$8 sps:$4 sm:$0xff]  }
  0x18   : > { %695 = vmatpush1.bf16.msra.mxu0 %v1535_v6  ;;  %1498 = vmatpush1.bf16.msra.mxu1 %v1535_v6  ;;  %v1561_v29 = vld [vmem:[%s1719_s5 + $0xb4] ss:$8 sps:$4 sm:$0xff]   ;;  %v1564_v31 = vld [vmem:[%s1719_s5 + $0xb0] ss:$8 sps:$4 sm:$0xff]   ;;  %v1565_v32 = vld [vmem:[%s1719_s5 + $0x44] ss:$8 sps:$4 sm:$0xff]  }
  0x19   : > { %696 = vmatprep.subr.bf16.mxu0 %v1613_v1  ;;  %1489 = vmatprep.subr.bf16.mxu1 %v1613_v1  ;;  %v1567_v33 = vld [vmem:[%s1719_s5 + $0xc4] ss:$8 sps:$4 sm:$0xff]   ;;  %v1569_v34 = vld [vmem:[%s1719_s5 + $0x40] ss:$8 sps:$4 sm:$0xff]   ;;  %v1571_v36 = vld [vmem:[%s1719_s5 + $0x54] ss:$8 sps:$4 sm:$0xff]  }
  0x1a   : > { %v1570_v35 = vld [vmem:[%s1719_s5 + $0xc0] ss:$8 sps:$4 sm:$0xff]   ;;  %v1573_v37 = vld [vmem:[%s1719_s5 + $0xd4] ss:$8 sps:$4 sm:$0xff]   ;;  %v1575_v38 = vld [vmem:[%s1719_s5 + $0x50] ss:$8 sps:$4 sm:$0xff]  }
  0x1b   : > { %v1576_v39 = vld [vmem:[%s1719_s5 + $0xd0] ss:$8 sps:$4 sm:$0xff]   ;;  %v1577_v40 = vld [vmem:[%s1719_s5 + $0x64] ss:$8 sps:$4 sm:$0xff]   ;;  %v1581_v42 = vld [vmem:[%s1719_s5 + $0x60] ss:$8 sps:$4 sm:$0xff]  }
  0x1c   : > { %697 = vmatpush1.bf16.msra.mxu0 %v1536_v9  ;;  %1499 = vmatpush1.bf16.msra.mxu1 %v1536_v9  ;;  %v1579_v41 = vld [vmem:[%s1719_s5 + $0xe4] ss:$8 sps:$4 sm:$0xff]   ;;  %v1582_v43 = vld [vmem:[%s1719_s5 + $0xe0] ss:$8 sps:$4 sm:$0xff]   ;;  %v1583_v44 = vld [vmem:[%s1719_s5 + $0x74] ss:$8 sps:$4 sm:$0xff]  }
  0x1d   : > { %698 = vmatprep.subr.bf16.mxu0 %v1613_v1  ;;  %1490 = vmatprep.subr.bf16.mxu1 %v1613_v1  ;;  %v1585_v45 = vld [vmem:[%s1719_s5 + $0xf4] ss:$8 sps:$4 sm:$0xff]   ;;  %v1587_v46 = vld [vmem:[%s1719_s5 + $0x70] ss:$8 sps:$4 sm:$0xff]   ;;  %v362_v49 = vld [vmem:[#allocation2 + $0x80] sm:$0xff] }
  0x1e   : > { %v1588_v47 = vld [vmem:[%s1719_s5 + $0xf0] ss:$8 sps:$4 sm:$0xff]   ;;  %v363_v53 = vld [vmem:[#allocation2 + $0x88] sm:$0xff] }
  0x1f   : > { %v349_v5 = vld [vmem:[#allocation2 + $0x18] sm:$0xff] }
  0x20   : > { %699 = vmatpush1.bf16.msra.mxu0 %v1537_v10  ;;  %1500 = vmatpush1.bf16.msra.mxu1 %v1537_v10  ;;  %v365_v6 = vld [vmem:[#allocation2 + $0x98] sm:$0xff] }
  0x21   : > { %700 = vmatprep.subr.bf16.mxu0 %v1613_v1  ;;  %1491 = vmatprep.subr.bf16.mxu1 %v1613_v1 }
  0x24   : > { %701 = vmatpush1.bf16.msra.mxu0 %v1538_v11  ;;  %1501 = vmatpush1.bf16.msra.mxu1 %v1538_v11 }
  0x25   : > { %702 = vmatprep.subr.bf16.mxu0 %v1613_v1  ;;  %1492 = vmatprep.subr.bf16.mxu1 %v1613_v1 }
  0x28   : > { %703 = vmatpush1.bf16.msra.mxu0 %v1539_v14  ;;  %1502 = vmatpush1.bf16.msra.mxu1 %v1539_v14 }
  0x29   : > { %704 = vmatprep.subr.bf16.mxu0 %v1613_v1  ;;  %1493 = vmatprep.subr.bf16.mxu1 %v1613_v1  ;;  %v364_v1 = vld [vmem:[#allocation2 + $0x90] sm:$0xff] }
  0x2c   : > { %705 = vmatpush1.bf16.msra.mxu0 %v684_v17  ;;  %1503 = vmatpush1.bf16.msra.mxu1 %v684_v17 }
  0x2f   : > { %719 = vmatmul.mubr.bf16.vlgmr.msra.gmra.mrb[0].mxu0 %v1541_v18  ;;  %783 = vmatmul.mubr.bf16.vlgmr.msra.gmra.mrb[0].mxu1 %v1544_v19 }
  0x30   : > { %1400 = vmatprep.mubr.msk.bf16.mxu0 %vm630_vm1, %v1547_v20  ;;  %1408 = vmatprep.mubr.msk.bf16.mxu1 %vm630_vm1, %v1549_v21 }
  0x37   : > { %727 = vmatmul.mubr.bf16.gmra.mrb[4].mxu0 %v1551_v22  ;;  %791 = vmatmul.mubr.bf16.gmra.mrb[4].mxu1 %v1552_v23 }
  0x38   : > { %1401 = vmatprep.mubr.msk.bf16.mxu0 %vm630_vm1, %v1553_v24  ;;  %1409 = vmatprep.mubr.msk.bf16.mxu1 %vm630_vm1, %v1555_v25 }
  0x3f   : > { %735 = vmatmul.mubr.bf16.gmra.mrb[8].mxu0 %v1557_v26  ;;  %799 = vmatmul.mubr.bf16.gmra.mrb[8].mxu1 %v1558_v27 }
  0x40   : > { %1402 = vmatprep.mubr.msk.bf16.mxu0 %vm630_vm1, %v1559_v28  ;;  %1410 = vmatprep.mubr.msk.bf16.mxu1 %vm630_vm1, %v1561_v29 }
  0x47   : > { %743 = vmatmul.mubr.bf16.gmra.mrb[12].mxu0 %v1563_v30  ;;  %807 = vmatmul.mubr.bf16.gmra.mrb[12].mxu1 %v1564_v31 }
  0x48   : > { %1403 = vmatprep.mubr.msk.bf16.mxu0 %vm630_vm1, %v1565_v32  ;;  %1411 = vmatprep.mubr.msk.bf16.mxu1 %vm630_vm1, %v1567_v33  ;;  %v350_v32 = vld [vmem:[#allocation2 + $0x20] sm:$0xff] }
  0x49   : > { %v366_v33 = vld [vmem:[#allocation2 + $0xa0] sm:$0xff] }
  0x4f   : > { %751 = vmatmul.mubr.bf16.gmra.mrb[16].mxu0 %v1569_v34  ;;  %815 = vmatmul.mubr.bf16.gmra.mrb[16].mxu1 %v1570_v35 }
  0x50   : > { %1404 = vmatprep.mubr.msk.bf16.mxu0 %vm630_vm1, %v1571_v36  ;;  %1412 = vmatprep.mubr.msk.bf16.mxu1 %vm630_vm1, %v1573_v37 }
  0x57   : > { %759 = vmatmul.mubr.bf16.gmra.mrb[20].mxu0 %v1575_v38  ;;  %823 = vmatmul.mubr.bf16.gmra.mrb[20].mxu1 %v1576_v39 }
  0x58   : > { %1405 = vmatprep.mubr.msk.bf16.mxu0 %vm630_vm1, %v1577_v40  ;;  %1413 = vmatprep.mubr.msk.bf16.mxu1 %vm630_vm1, %v1579_v41 }
  0x5f   : > { %767 = vmatmul.mubr.bf16.gmra.mrb[24].mxu0 %v1581_v42  ;;  %831 = vmatmul.mubr.bf16.gmra.mrb[24].mxu1 %v1582_v43  ;;  %v351_v42 = vld [vmem:[#allocation2 + $0x28] sm:$0xff] }
  0x60   : > { %1406 = vmatprep.mubr.msk.bf16.mxu0 %vm630_vm1, %v1583_v44  ;;  %1414 = vmatprep.mubr.msk.bf16.mxu1 %vm630_vm1, %v1585_v45  ;;  %v367_v43 = vld [vmem:[#allocation2 + $0xa8] sm:$0xff] }
  0x67   : > { %775 = vmatmul.mubr.bf16.gmra.mrb[28].mxu0 %v1587_v46  ;;  %839 = vmatmul.mubr.bf16.gmra.mrb[28].mxu1 %v1588_v47 }
 0x102   : > { %v720_v50 = vpop.f32.mrb[0].mxu0  ;;  %v784_v51 = vpop.f32.mrb[0].mxu1 }
 0x103   : > { %v847_v54 = vadd.f32 %v720_v50, %v346_v48  ;;  %v863_v55 = vadd.f32 %v784_v51, %v362_v49  ;;  %v722_v56 = vpop.f32.mrb[1].mxu0  ;;  %v786_v57 = vpop.f32.mrb[1].mxu1 }
 0x104   : > { %v723_v58 = vpop.f32.mrb[2].mxu0  ;;  %v787_v59 = vpop.f32.mrb[2].mxu1 }
 0x105   : > { %880 = vst.msk [vmem:[#allocation2] sm:$0xff] %vm313_vm0, %v847_v54  ;;  %896 = vst.msk [vmem:[#allocation2 + $0x80] sm:$0xff] %vm313_vm0, %v863_v55  ;;  %v848_v60 = vadd.f32 %v723_v58, %v347_v52  ;;  %v864_v61 = vadd.f32 %v787_v59, %v363_v53  ;;  %v725_v62 = vpop.f32.mrb[3].mxu0  ;;  %v789_v63 = vpop.f32.mrb[3].mxu1 }
 0x107   : > { %881 = vst.msk [vmem:[#allocation2 + $0x8] sm:$0xff] %vm313_vm0, %v848_v60  ;;  %897 = vst.msk [vmem:[#allocation2 + $0x88] sm:$0xff] %vm313_vm0, %v864_v61 }
 0x10a   : > { %v728_v3 = vpop.f32.mrb[4].mxu0  ;;  %v792_v4 = vpop.f32.mrb[4].mxu1 }
 0x10b   : > { %v849_v7 = vadd.f32 %v728_v3, %v348_v0  ;;  %v865_v8 = vadd.f32 %v792_v4, %v364_v1  ;;  %v730_v9 = vpop.f32.mrb[5].mxu0  ;;  %v794_v10 = vpop.f32.mrb[5].mxu1 }
 0x10c   : > { %v915_v11 = vld [vmem:[#allocation2] sm:$0xff]  ;;  %v731_v14 = vpop.f32.mrb[6].mxu0  ;;  %v795_v15 = vpop.f32.mrb[6].mxu1  ;;  %v353_v9 = vld [vmem:[#allocation2 + $0x38] sm:$0xff] }
 0x10d   : > { %v931_v13 = vld [vmem:[#allocation2 + $0x80] sm:$0xff]  ;;  %v954_v16 = vmul.f32 %v1806_v2, %v915_v11  ;;  %882 = vst.msk [vmem:[#allocation2 + $0x10] sm:$0xff] %vm313_vm0, %v849_v7  ;;  %898 = vst.msk [vmem:[#allocation2 + $0x90] sm:$0xff] %vm313_vm0, %v865_v8  ;;  %v850_v18 = vadd.f32 %v731_v14, %v349_v5  ;;  %v866_v19 = vadd.f32 %v795_v15, %v365_v6  ;;  %v733_v20 = vpop.f32.mrb[7].mxu0  ;;  %v797_v21 = vpop.f32.mrb[7].mxu1  ;;  %v352_v5 = vld [vmem:[#allocation2 + $0x30] sm:$0xff] }
 0x10e   : > { %v970_v17 = vmul.f32 %v1806_v2, %v931_v13  ;;  %v916_v22 = vld [vmem:[#allocation2 + $0x8] sm:$0xff]  ;;  %v368_v6 = vld [vmem:[#allocation2 + $0xb0] sm:$0xff]  ;;  %v369_v10 = vld [vmem:[#allocation2 + $0xb8] sm:$0xff] }
 0x10f   : > { %v932_v23 = vld [vmem:[#allocation2 + $0x88] sm:$0xff]  ;;  %v993_v24 = vadd.f32 %v1811_v12, %v954_v16  ;;  %v955_v26 = vmul.f32 %v1806_v2, %v916_v22  ;;  %883 = vst.msk [vmem:[#allocation2 + $0x18] sm:$0xff] %vm313_vm0, %v850_v18  ;;  %899 = vst.msk [vmem:[#allocation2 + $0x98] sm:$0xff] %vm313_vm0, %v866_v19 }
 0x110   : > { %v1009_v25 = vadd.f32 %v1811_v12, %v970_v17  ;;  %v971_v27 = vmul.f32 %v1806_v2, %v932_v23 }
 0x111   : > { %v1025_v28 = vmax.f32 %v993_v24, 0.0  ;;  %v994_v30 = vadd.f32 %v1811_v12, %v955_v26 }
 0x112   : > { %v1041_v29 = vmax.f32 %v1009_v25, 0.0  ;;  %v1010_v31 = vadd.f32 %v1811_v12, %v971_v27  ;;  %v736_v34 = vpop.f32.mrb[8].mxu0  ;;  %v800_v35 = vpop.f32.mrb[8].mxu1 }
 0x113   : > { %v1452_v36 = vpack.c.bf16 %v1025_v28, %v1025_v28  ;;  %v1026_v38 = vmax.f32 %v994_v30, 0.0  ;;  %v738_v40 = vpop.f32.mrb[9].mxu0  ;;  %v802_v41 = vpop.f32.mrb[9].mxu1  ;;  %v851_v46 = vadd.f32 %v736_v34, %v350_v32  ;;  %v867_v47 = vadd.f32 %v800_v35, %v366_v33 }
 0x114   : > { %v1468_v37 = vpack.c.bf16 %v1041_v29, %v1041_v29  ;;  %v1042_v39 = vmax.f32 %v1010_v31, 0.0  ;;  %v917_v44 = vld [vmem:[#allocation2 + $0x10] sm:$0xff]  ;;  %v739_v48 = vpop.f32.mrb[10].mxu0  ;;  %v803_v49 = vpop.f32.mrb[10].mxu1 }
 0x115   : > { %v933_v45 = vld [vmem:[#allocation2 + $0x90] sm:$0xff]  ;;  %1186 = vst.msk [vmem:[%s1829_s28] sm:$0xf] %vm1185_vm4, %v1452_v36  ;;  %v1453_v50 = vpack.c.bf16 %v1026_v38, %v1026_v38  ;;  %v956_v52 = vmul.f32 %v1806_v2, %v917_v44  ;;  %v741_v54 = vpop.f32.mrb[11].mxu0  ;;  %v805_v55 = vpop.f32.mrb[11].mxu1  ;;  %v852_v58 = vadd.f32 %v739_v48, %v351_v42  ;;  %v868_v59 = vadd.f32 %v803_v49, %v367_v43  ;;  %v354_v38 = vld [vmem:[#allocation2 + $0x40] sm:$0xff] }
 0x116   : > { %1202 = vst.msk [vmem:[%s1829_s28 + $0x40] sm:$0xf] %vm1185_vm4, %v1468_v37  ;;  %v1469_v51 = vpack.c.bf16 %v1042_v39, %v1042_v39  ;;  %v972_v53 = vmul.f32 %v1806_v2, %v933_v45  ;;  %v918_v56 = vld [vmem:[#allocation2 + $0x18] sm:$0xff]  ;;  %v370_v39 = vld [vmem:[#allocation2 + $0xc0] sm:$0xff] }
 0x117   : > { %v934_v57 = vld [vmem:[#allocation2 + $0x98] sm:$0xff]  ;;  %884 = vst.msk [vmem:[#allocation2 + $0x20] sm:$0xff] %vm313_vm0, %v851_v46  ;;  %900 = vst.msk [vmem:[#allocation2 + $0xa0] sm:$0xff] %vm313_vm0, %v867_v47  ;;  %v995_v60 = vadd.f32 %v1811_v12, %v956_v52  ;;  %v957_v62 = vmul.f32 %v1806_v2, %v918_v56  ;;  %v355_v46 = vld [vmem:[#allocation2 + $0x48] sm:$0xff] }
 0x118   : > { %1187 = vst.msk [vmem:[%s1829_s28 + $0x4] sm:$0xf] %vm1185_vm4, %v1453_v50  ;;  %1203 = vst.msk [vmem:[%s1829_s28 + $0x44] sm:$0xf] %vm1185_vm4, %v1469_v51  ;;  %v1011_v61 = vadd.f32 %v1811_v12, %v972_v53  ;;  %v973_v63 = vmul.f32 %v1806_v2, %v934_v57  ;;  %v371_v47 = vld [vmem:[#allocation2 + $0xc8] sm:$0xff] }
 0x119   : > { %885 = vst.msk [vmem:[#allocation2 + $0x28] sm:$0xff] %vm313_vm0, %v852_v58  ;;  %901 = vst.msk [vmem:[#allocation2 + $0xa8] sm:$0xff] %vm313_vm0, %v868_v59  ;;  %v1027_v0 = vmax.f32 %v995_v60, 0.0  ;;  %v996_v3 = vadd.f32 %v1811_v12, %v957_v62 }
 0x11a   : > { %v1043_v1 = vmax.f32 %v1011_v61, 0.0  ;;  %v1012_v4 = vadd.f32 %v1811_v12, %v973_v63  ;;  %v744_v7 = vpop.f32.mrb[12].mxu0  ;;  %v808_v8 = vpop.f32.mrb[12].mxu1 }
 0x11b   : > { %v1454_v11 = vpack.c.bf16 %v1027_v0, %v1027_v0  ;;  %v1028_v14 = vmax.f32 %v996_v3, 0.0  ;;  %v746_v16 = vpop.f32.mrb[13].mxu0  ;;  %v810_v17 = vpop.f32.mrb[13].mxu1  ;;  %v853_v18 = vadd.f32 %v744_v7, %v352_v5  ;;  %v869_v19 = vadd.f32 %v808_v8, %v368_v6 }
 0x11c   : > { %v1470_v13 = vpack.c.bf16 %v1043_v1, %v1043_v1  ;;  %v1044_v15 = vmax.f32 %v1012_v4, 0.0  ;;  %v747_v20 = vpop.f32.mrb[14].mxu0  ;;  %v811_v21 = vpop.f32.mrb[14].mxu1 }
 0x11d   : > { %1188 = vst.msk [vmem:[%s1829_s28 + $0x8] sm:$0xf] %vm1185_vm4, %v1454_v11  ;;  %v1455_v22 = vpack.c.bf16 %v1028_v14, %v1028_v14  ;;  %v854_v26 = vadd.f32 %v747_v20, %v353_v9  ;;  %v870_v27 = vadd.f32 %v811_v21, %v369_v10  ;;  %v749_v28 = vpop.f32.mrb[15].mxu0  ;;  %v813_v29 = vpop.f32.mrb[15].mxu1  ;;  %v356_v11 = vld [vmem:[#allocation2 + $0x50] sm:$0xff] }
 0x11e   : > { %1204 = vst.msk [vmem:[%s1829_s28 + $0x48] sm:$0xf] %vm1185_vm4, %v1470_v13  ;;  %v1471_v23 = vpack.c.bf16 %v1044_v15, %v1044_v15  ;;  %v919_v24 = vld [vmem:[#allocation2 + $0x20] sm:$0xff]  ;;  %v372_v13 = vld [vmem:[#allocation2 + $0xd0] sm:$0xff] }
 0x11f   : > { %v935_v25 = vld [vmem:[#allocation2 + $0xa0] sm:$0xff]  ;;  %v958_v30 = vmul.f32 %v1806_v2, %v919_v24  ;;  %886 = vst.msk [vmem:[#allocation2 + $0x30] sm:$0xff] %vm313_vm0, %v853_v18  ;;  %902 = vst.msk [vmem:[#allocation2 + $0xb0] sm:$0xff] %vm313_vm0, %v869_v19 }
 0x120   : > { %v974_v31 = vmul.f32 %v1806_v2, %v935_v25  ;;  %1189 = vst.msk [vmem:[%s1829_s28 + $0xc] sm:$0xf] %vm1185_vm4, %v1455_v22  ;;  %1205 = vst.msk [vmem:[%s1829_s28 + $0x4c] sm:$0xf] %vm1185_vm4, %v1471_v23  ;;  %v920_v32 = vld [vmem:[#allocation2 + $0x28] sm:$0xff] }
 0x121   : > { %v936_v33 = vld [vmem:[#allocation2 + $0xa8] sm:$0xff]  ;;  %887 = vst.msk [vmem:[#allocation2 + $0x38] sm:$0xff] %vm313_vm0, %v854_v26  ;;  %903 = vst.msk [vmem:[#allocation2 + $0xb8] sm:$0xff] %vm313_vm0, %v870_v27  ;;  %v997_v34 = vadd.f32 %v1811_v12, %v958_v30  ;;  %v959_v36 = vmul.f32 %v1806_v2, %v920_v32  ;;  %v357_v26 = vld [vmem:[#allocation2 + $0x58] sm:$0xff] }
 0x122   : > { %v1013_v35 = vadd.f32 %v1811_v12, %v974_v31  ;;  %v975_v37 = vmul.f32 %v1806_v2, %v936_v33  ;;  %v752_v44 = vpop.f32.mrb[16].mxu0  ;;  %v816_v45 = vpop.f32.mrb[16].mxu1  ;;  %v373_v27 = vld [vmem:[#allocation2 + $0xd8] sm:$0xff] }
 0x123   : > { %v1029_v40 = vmax.f32 %v997_v34, 0.0  ;;  %v998_v42 = vadd.f32 %v1811_v12, %v959_v36  ;;  %v855_v48 = vadd.f32 %v752_v44, %v354_v38  ;;  %v871_v49 = vadd.f32 %v816_v45, %v370_v39  ;;  %v754_v50 = vpop.f32.mrb[17].mxu0  ;;  %v818_v51 = vpop.f32.mrb[17].mxu1 }
 0x124   : > { %v1045_v41 = vmax.f32 %v1013_v35, 0.0  ;;  %v1014_v43 = vadd.f32 %v1811_v12, %v975_v37  ;;  %v755_v56 = vpop.f32.mrb[18].mxu0  ;;  %v819_v57 = vpop.f32.mrb[18].mxu1 }
 0x125   : > { %v1456_v52 = vpack.c.bf16 %v1029_v40, %v1029_v40  ;;  %v1030_v54 = vmax.f32 %v998_v42, 0.0  ;;  %888 = vst.msk [vmem:[#allocation2 + $0x40] sm:$0xff] %vm313_vm0, %v855_v48  ;;  %904 = vst.msk [vmem:[#allocation2 + $0xc0] sm:$0xff] %vm313_vm0, %v871_v49  ;;  %v856_v60 = vadd.f32 %v755_v56, %v355_v46  ;;  %v872_v61 = vadd.f32 %v819_v57, %v371_v47  ;;  %v757_v62 = vpop.f32.mrb[19].mxu0  ;;  %v821_v63 = vpop.f32.mrb[19].mxu1 }
 0x126   : > { %v1472_v53 = vpack.c.bf16 %v1045_v41, %v1045_v41  ;;  %v1046_v55 = vmax.f32 %v1014_v43, 0.0  ;;  %v921_v58 = vld [vmem:[#allocation2 + $0x30] sm:$0xff]  ;;  %v359_v62 = vld [vmem:[#allocation2 + $0x68] sm:$0xff] }
 0x127   : > { %v937_v59 = vld [vmem:[#allocation2 + $0xb0] sm:$0xff]  ;;  %1190 = vst.msk [vmem:[%s1829_s28 + $0x10] sm:$0xf] %vm1185_vm4, %v1456_v52  ;;  %v1457_v0 = vpack.c.bf16 %v1030_v54, %v1030_v54  ;;  %v960_v3 = vmul.f32 %v1806_v2, %v921_v58  ;;  %v358_v52 = vld [vmem:[#allocation2 + $0x60] sm:$0xff]  ;;  %v375_v63 = vld [vmem:[#allocation2 + $0xe8] sm:$0xff] }
 0x128   : > { %1206 = vst.msk [vmem:[%s1829_s28 + $0x50] sm:$0xf] %vm1185_vm4, %v1472_v53  ;;  %v1473_v1 = vpack.c.bf16 %v1046_v55, %v1046_v55  ;;  %v976_v4 = vmul.f32 %v1806_v2, %v937_v59  ;;  %v922_v5 = vld [vmem:[#allocation2 + $0x38] sm:$0xff]  ;;  %v374_v53 = vld [vmem:[#allocation2 + $0xe0] sm:$0xff] }
 0x129   : > { %v938_v6 = vld [vmem:[#allocation2 + $0xb8] sm:$0xff]  ;;  %v961_v7 = vmul.f32 %v1806_v2, %v922_v5  ;;  %889 = vst.msk [vmem:[#allocation2 + $0x48] sm:$0xff] %vm313_vm0, %v856_v60  ;;  %905 = vst.msk [vmem:[#allocation2 + $0xc8] sm:$0xff] %vm313_vm0, %v872_v61  ;;  %v999_v9 = vadd.f32 %v1811_v12, %v960_v3 }
 0x12a   : > { %v977_v8 = vmul.f32 %v1806_v2, %v938_v6  ;;  %1191 = vst.msk [vmem:[%s1829_s28 + $0x14] sm:$0xf] %vm1185_vm4, %v1457_v0  ;;  %1207 = vst.msk [vmem:[%s1829_s28 + $0x54] sm:$0xf] %vm1185_vm4, %v1473_v1  ;;  %v1015_v10 = vadd.f32 %v1811_v12, %v976_v4  ;;  %v760_v18 = vpop.f32.mrb[20].mxu0  ;;  %v824_v19 = vpop.f32.mrb[20].mxu1 }
 0x12b   : > { %v1000_v14 = vadd.f32 %v1811_v12, %v961_v7  ;;  %v1031_v16 = vmax.f32 %v999_v9, 0.0  ;;  %v857_v22 = vadd.f32 %v760_v18, %v356_v11  ;;  %v873_v23 = vadd.f32 %v824_v19, %v372_v13  ;;  %v762_v24 = vpop.f32.mrb[21].mxu0  ;;  %v826_v25 = vpop.f32.mrb[21].mxu1 }
 0x12c   : > { %v1016_v15 = vadd.f32 %v1811_v12, %v977_v8  ;;  %v1047_v17 = vmax.f32 %v1015_v10, 0.0  ;;  %v923_v30 = vld [vmem:[#allocation2 + $0x40] sm:$0xff]  ;;  %v763_v32 = vpop.f32.mrb[22].mxu0  ;;  %v827_v33 = vpop.f32.mrb[22].mxu1 }
 0x12d   : > { %v1032_v20 = vmax.f32 %v1000_v14, 0.0  ;;  %v1458_v28 = vpack.c.bf16 %v1031_v16, %v1031_v16  ;;  %v939_v31 = vld [vmem:[#allocation2 + $0xc0] sm:$0xff]  ;;  %v962_v36 = vmul.f32 %v1806_v2, %v923_v30  ;;  %890 = vst.msk [vmem:[#allocation2 + $0x50] sm:$0xff] %vm313_vm0, %v857_v22  ;;  %906 = vst.msk [vmem:[#allocation2 + $0xd0] sm:$0xff] %vm313_vm0, %v873_v23  ;;  %v765_v38 = vpop.f32.mrb[23].mxu0  ;;  %v829_v39 = vpop.f32.mrb[23].mxu1  ;;  %v858_v42 = vadd.f32 %v763_v32, %v357_v26 }
 0x12e   : > { %v1048_v21 = vmax.f32 %v1016_v15, 0.0  ;;  %v1474_v29 = vpack.c.bf16 %v1047_v17, %v1047_v17  ;;  %v978_v37 = vmul.f32 %v1806_v2, %v939_v31  ;;  %v874_v43 = vadd.f32 %v827_v33, %v373_v27  ;;  %v360_v22 = vld [vmem:[#allocation2 + $0x70] sm:$0xff]  ;;  %v361_v30 = vld [vmem:[#allocation2 + $0x78] sm:$0xff] }
 0x12f   : > { %v1459_v34 = vpack.c.bf16 %v1032_v20, %v1032_v20  ;;  %1192 = vst.msk [vmem:[%s1829_s28 + $0x18] sm:$0xf] %vm1185_vm4, %v1458_v28  ;;  %v1001_v44 = vadd.f32 %v1811_v12, %v962_v36  ;;  %v376_v23 = vld [vmem:[#allocation2 + $0xf0] sm:$0xff]  ;;  %v377_v31 = vld [vmem:[#allocation2 + $0xf8] sm:$0xff] }
 0x130   : > { %v1475_v35 = vpack.c.bf16 %v1048_v21, %v1048_v21  ;;  %1208 = vst.msk [vmem:[%s1829_s28 + $0x58] sm:$0xf] %vm1185_vm4, %v1474_v29  ;;  %v924_v40 = vld [vmem:[#allocation2 + $0x48] sm:$0xff]  ;;  %v1017_v45 = vadd.f32 %v1811_v12, %v978_v37 }
 0x131   : > { %v940_v41 = vld [vmem:[#allocation2 + $0xc8] sm:$0xff]  ;;  %1193 = vst.msk [vmem:[%s1829_s28 + $0x1c] sm:$0xf] %vm1185_vm4, %v1459_v34  ;;  %v963_v46 = vmul.f32 %v1806_v2, %v924_v40  ;;  %v1033_v48 = vmax.f32 %v1001_v44, 0.0 }
 0x132   : > { %1209 = vst.msk [vmem:[%s1829_s28 + $0x5c] sm:$0xf] %vm1185_vm4, %v1475_v35  ;;  %v979_v47 = vmul.f32 %v1806_v2, %v940_v41  ;;  %v1049_v49 = vmax.f32 %v1017_v45, 0.0  ;;  %v768_v54 = vpop.f32.mrb[24].mxu0  ;;  %v832_v55 = vpop.f32.mrb[24].mxu1 }
 0x133   : > { %891 = vst.msk [vmem:[#allocation2 + $0x58] sm:$0xff] %vm313_vm0, %v858_v42  ;;  %907 = vst.msk [vmem:[#allocation2 + $0xd8] sm:$0xff] %vm313_vm0, %v874_v43  ;;  %v1002_v50 = vadd.f32 %v1811_v12, %v963_v46  ;;  %v1460_v56 = vpack.c.bf16 %v1033_v48, %v1033_v48  ;;  %v770_v60 = vpop.f32.mrb[25].mxu0  ;;  %v834_v61 = vpop.f32.mrb[25].mxu1  ;;  %v859_v3 = vadd.f32 %v768_v54, %v358_v52 }
 0x134   : > { %v1018_v51 = vadd.f32 %v1811_v12, %v979_v47  ;;  %v1476_v57 = vpack.c.bf16 %v1049_v49, %v1049_v49  ;;  %v925_v0 = vld [vmem:[#allocation2 + $0x50] sm:$0xff]  ;;  %v875_v4 = vadd.f32 %v832_v55, %v374_v53  ;;  %v771_v5 = vpop.f32.mrb[26].mxu0  ;;  %v835_v6 = vpop.f32.mrb[26].mxu1 }
 0x135   : > { %v1034_v58 = vmax.f32 %v1002_v50, 0.0  ;;  %v941_v1 = vld [vmem:[#allocation2 + $0xd0] sm:$0xff]  ;;  %1194 = vst.msk [vmem:[%s1829_s28 + $0x20] sm:$0xf] %vm1185_vm4, %v1460_v56  ;;  %v964_v9 = vmul.f32 %v1806_v2, %v925_v0  ;;  %v773_v11 = vpop.f32.mrb[27].mxu0  ;;  %v837_v13 = vpop.f32.mrb[27].mxu1  ;;  %v860_v14 = vadd.f32 %v771_v5, %v359_v62  ;;  %v876_v15 = vadd.f32 %v835_v6, %v375_v63 }
 0x136   : > { %v1050_v59 = vmax.f32 %v1018_v51, 0.0  ;;  %1210 = vst.msk [vmem:[%s1829_s28 + $0x60] sm:$0xf] %vm1185_vm4, %v1476_v57  ;;  %v980_v10 = vmul.f32 %v1806_v2, %v941_v1 }
 0x137   : > { %v1461_v7 = vpack.c.bf16 %v1034_v58, %v1034_v58  ;;  %892 = vst.msk [vmem:[#allocation2 + $0x60] sm:$0xff] %vm313_vm0, %v859_v3  ;;  %908 = vst.msk [vmem:[#allocation2 + $0xe0] sm:$0xff] %vm313_vm0, %v875_v4  ;;  %v1003_v16 = vadd.f32 %v1811_v12, %v964_v9 }
 0x138   : > { %v1477_v8 = vpack.c.bf16 %v1050_v59, %v1050_v59  ;;  %v1019_v17 = vadd.f32 %v1811_v12, %v980_v10  ;;  %893 = vst.msk [vmem:[#allocation2 + $0x68] sm:$0xff] %vm313_vm0, %v860_v14  ;;  %909 = vst.msk [vmem:[#allocation2 + $0xe8] sm:$0xff] %vm313_vm0, %v876_v15 }
 0x139   : > { %1195 = vst.msk [vmem:[%s1829_s28 + $0x24] sm:$0xf] %vm1185_vm4, %v1461_v7  ;;  %v1035_v24 = vmax.f32 %v1003_v16, 0.0 }
 0x13a   : > { %1211 = vst.msk [vmem:[%s1829_s28 + $0x64] sm:$0xf] %vm1185_vm4, %v1477_v8  ;;  %v926_v18 = vld [vmem:[#allocation2 + $0x58] sm:$0xff]  ;;  %v1051_v25 = vmax.f32 %v1019_v17, 0.0  ;;  %v776_v28 = vpop.f32.mrb[28].mxu0  ;;  %v840_v29 = vpop.f32.mrb[28].mxu1 }
 0x13b   : > { %v942_v19 = vld [vmem:[#allocation2 + $0xd8] sm:$0xff]  ;;  %v965_v20 = vmul.f32 %v1806_v2, %v926_v18  ;;  %v1462_v32 = vpack.c.bf16 %v1035_v24, %v1035_v24  ;;  %v861_v34 = vadd.f32 %v776_v28, %v360_v22  ;;  %v877_v35 = vadd.f32 %v840_v29, %v376_v23  ;;  %v778_v36 = vpop.f32.mrb[29].mxu0  ;;  %v842_v37 = vpop.f32.mrb[29].mxu1 }
 0x13c   : > { %v981_v21 = vmul.f32 %v1806_v2, %v942_v19  ;;  %v1478_v33 = vpack.c.bf16 %v1051_v25, %v1051_v25  ;;  %v779_v40 = vpop.f32.mrb[30].mxu0  ;;  %v843_v41 = vpop.f32.mrb[30].mxu1 }
 0x13d   : > { %v1004_v26 = vadd.f32 %v1811_v12, %v965_v20  ;;  %1196 = vst.msk [vmem:[%s1829_s28 + $0x28] sm:$0xf] %vm1185_vm4, %v1462_v32  ;;  %v862_v44 = vadd.f32 %v779_v40, %v361_v30  ;;  %v878_v45 = vadd.f32 %v843_v41, %v377_v31  ;;  %v781_v46 = vpop.f32.mrb[31].mxu0  ;;  %v845_v47 = vpop.f32.mrb[31].mxu1 }
 0x13e   : > { %v1020_v27 = vadd.f32 %v1811_v12, %v981_v21  ;;  %1212 = vst.msk [vmem:[%s1829_s28 + $0x68] sm:$0xf] %vm1185_vm4, %v1478_v33  ;;  %v927_v42 = vld [vmem:[#allocation2 + $0x60] sm:$0xff] }
 0x13f   : > { %v1036_v38 = vmax.f32 %v1004_v26, 0.0  ;;  %v943_v43 = vld [vmem:[#allocation2 + $0xe0] sm:$0xff]  ;;  %894 = vst.msk [vmem:[#allocation2 + $0x70] sm:$0xff] %vm313_vm0, %v861_v34  ;;  %910 = vst.msk [vmem:[#allocation2 + $0xf0] sm:$0xff] %vm313_vm0, %v877_v35  ;;  %v966_v50 = vmul.f32 %v1806_v2, %v927_v42  ;;  %v928_v52 = vld [vmem:[#allocation2 + $0x68] sm:$0xff] }
 0x140   : > { %v1052_v39 = vmax.f32 %v1020_v27, 0.0  ;;  %v982_v51 = vmul.f32 %v1806_v2, %v943_v43  ;;  %v944_v53 = vld [vmem:[#allocation2 + $0xe8] sm:$0xff]  ;;  %895 = vst.msk [vmem:[#allocation2 + $0x78] sm:$0xff] %vm313_vm0, %v862_v44  ;;  %911 = vst.msk [vmem:[#allocation2 + $0xf8] sm:$0xff] %vm313_vm0, %v878_v45  ;;  %v967_v56 = vmul.f32 %v1806_v2, %v928_v52 }
 0x141   : > { %v1463_v48 = vpack.c.bf16 %v1036_v38, %v1036_v38  ;;  %v1005_v54 = vadd.f32 %v1811_v12, %v966_v50  ;;  %v983_v57 = vmul.f32 %v1806_v2, %v944_v53 }
 0x142   : > { %v1479_v49 = vpack.c.bf16 %v1052_v39, %v1052_v39  ;;  %v1021_v55 = vadd.f32 %v1811_v12, %v982_v51  ;;  %v1006_v60 = vadd.f32 %v1811_v12, %v967_v56 }
 0x143   : > { %1197 = vst.msk [vmem:[%s1829_s28 + $0x2c] sm:$0xf] %vm1185_vm4, %v1463_v48  ;;  %v1037_v58 = vmax.f32 %v1005_v54, 0.0  ;;  %v1022_v61 = vadd.f32 %v1811_v12, %v983_v57 }
 0x144   : > { %1213 = vst.msk [vmem:[%s1829_s28 + $0x6c] sm:$0xf] %vm1185_vm4, %v1479_v49  ;;  %v1053_v59 = vmax.f32 %v1021_v55, 0.0  ;;  %v1038_v0 = vmax.f32 %v1006_v60, 0.0 }
 0x145   : > { %v1464_v62 = vpack.c.bf16 %v1037_v58, %v1037_v58  ;;  %v1054_v1 = vmax.f32 %v1022_v61, 0.0 }
 0x146   : > { %v1480_v63 = vpack.c.bf16 %v1053_v59, %v1053_v59  ;;  %v929_v3 = vld [vmem:[#allocation2 + $0x70] sm:$0xff]  ;;  %v1465_v7 = vpack.c.bf16 %v1038_v0, %v1038_v0 }
 0x147   : > { %v945_v4 = vld [vmem:[#allocation2 + $0xf0] sm:$0xff]  ;;  %v968_v5 = vmul.f32 %v1806_v2, %v929_v3  ;;  %1198 = vst.msk [vmem:[%s1829_s28 + $0x30] sm:$0xf] %vm1185_vm4, %v1464_v62  ;;  %v1481_v8 = vpack.c.bf16 %v1054_v1, %v1054_v1  ;;  %v930_v9 = vld [vmem:[#allocation2 + $0x78] sm:$0xff] }
 0x148   : > { %v984_v6 = vmul.f32 %v1806_v2, %v945_v4  ;;  %1214 = vst.msk [vmem:[%s1829_s28 + $0x70] sm:$0xf] %vm1185_vm4, %v1480_v63  ;;  %v946_v10 = vld [vmem:[#allocation2 + $0xf8] sm:$0xff]  ;;  %v969_v14 = vmul.f32 %v1806_v2, %v930_v9  ;;  %1199 = vst.msk [vmem:[%s1829_s28 + $0x34] sm:$0xf] %vm1185_vm4, %v1465_v7 }
 0x149   : > { %v1007_v11 = vadd.f32 %v1811_v12, %v968_v5  ;;  %v985_v15 = vmul.f32 %v1806_v2, %v946_v10  ;;  %1215 = vst.msk [vmem:[%s1829_s28 + $0x74] sm:$0xf] %vm1185_vm4, %v1481_v8 }
 0x14a   : > { %v1023_v13 = vadd.f32 %v1811_v12, %v984_v6  ;;  %v1008_v18 = vadd.f32 %v1811_v12, %v969_v14 }
 0x14b   : > { %v1039_v16 = vmax.f32 %v1007_v11, 0.0  ;;  %v1024_v19 = vadd.f32 %v1811_v12, %v985_v15 }
 0x14c   : > { %v1055_v17 = vmax.f32 %v1023_v13, 0.0  ;;  %v1040_v22 = vmax.f32 %v1008_v18, 0.0 }
 0x14d   : > { %v1466_v20 = vpack.c.bf16 %v1039_v16, %v1039_v16  ;;  %v1056_v23 = vmax.f32 %v1024_v19, 0.0 }
 0x14e   : > { %v1482_v21 = vpack.c.bf16 %v1055_v17, %v1055_v17  ;;  %v1467_v2 = vpack.c.bf16 %v1040_v22, %v1040_v22 }
 0x14f   : > { %1200 = vst.msk [vmem:[%s1829_s28 + $0x38] sm:$0xf] %vm1185_vm4, %v1466_v20  ;;  %v1483_v24 = vpack.c.bf16 %v1056_v23, %v1056_v23 }
 0x150   : > { %1216 = vst.msk [vmem:[%s1829_s28 + $0x78] sm:$0xf] %vm1185_vm4, %v1482_v21  ;;  %1201 = vst.msk [vmem:[%s1829_s28 + $0x3c] sm:$0xf] %vm1185_vm4, %v1467_v2 }
 0x151   : > { %1217 = vst.msk [vmem:[%s1829_s28 + $0x7c] sm:$0xf] %vm1185_vm4, %v1483_v24 }
 0x152 PF: > { %s14_s17 = sadd.s32 1, %s1611_s17   ;;  %s1989_s15 = smov %s1607_s16 }
 0x153   : > { %p11_p5 = scmp.ge.s32.totalorder %s14_s17, 10   ;;  %s1990_s16 = smov %s1992_s18 }
 0x155   :  { %13 = sbr.rel (!%p11_p5) target bundleno = 2 (0x2), region = 83 }

// kernel: stem_forward.3
= control target key start
LH: loop header
LB: loop body
LE: loop exit
PB: predicated region body
PF: predicated region fallthrough
CT: control target
= control target key end

     0   :  { %s1963_s0 = inlined_call_operand.vmem [shape: bf16[512,64], index: 0, kind: input, shape index: {}]   ;;  %s1964_s1 = inlined_call_operand.vmem [shape: bf16[512,64], index: 1, kind: input, shape index: {}]   ;;  %s1965_s2 = inlined_call_operand.vmem [shape: bf16[512,64], index: 2, kind: input, shape index: {}]   ;;  %s1966_s3 = inlined_call_operand.vmem [shape: bf16[512,64], index: 3, kind: input, shape index: {}]   ;;  %s1967_s4 = inlined_call_operand.vmem [shape: bf16[512,64], index: 4, kind: input, shape index: {}]   ;;  %s1968_s5 = inlined_call_operand.vmem [shape: bf16[512,64], index: 5, kind: input, shape index: {}]   ;;  %s1969_s6 = inlined_call_operand.vmem [shape: bf16[512,64], index: 6, kind: input, shape index: {}]   ;;  %s1970_s7 = inlined_call_operand.vmem [shape: bf16[512,64], index: 7, kind: input, shape index: {}]   ;;  %s1971_s8 = inlined_call_operand.vmem [shape: bf16[512,64], index: 8, kind: input, shape index: {}]   ;;  %s1972_s9 = inlined_call_operand.hbm [shape: bf16[512,64], index: 9, kind: output, shape index: {}]  }
   0x1   :  { %1974 = sst [smem:[#allocation5_spill]] %s1963_s0 }
   0x2   :  { %1975 = sst [smem:[#allocation6_spill]] %s1964_s1 }
   0x3   :  { %1976 = sst [smem:[#allocation7_spill]] %s1965_s2 }
   0x4   :  { %14 = vsyncpa [#allocation3], 0 }
   0x5   :  { %16 = vsyncpa [#allocation3 + $0x1], 0  ;;  %s1446_s30 = smov 0   ;;  %s1448_s10 = smov 0  }
   0x6   :  { %s1450_s11 = smov 0   ;;  %s1452_s12 = smov 0  }
   0x7 LB: > { %s1467_s13 = sadd.s32 4294967295, %s1391_s12   ;;  %s1259_s14 = sadd.s32 4294967294, %s1391_s12   ;;  %s1391_s12 = sphi %s1452_s12, %s1986_s12   ;;  %s1387_s11 = sphi %s1450_s11, %s1985_s11   ;;  %s1383_s10 = sphi %s1448_s10, %s1984_s10   ;;  %s1379_s30 = sphi %s1446_s30, %s1983_s30  }
   0x8   : > { %s1471_s15 = sadd.s32 1, %s1391_s12   ;;  %s263_s16 = sadd.s32 1, %s1387_s11 }
   0x9   : > { %s260_s17 = ssub.s32 %s1391_s12, %s1471_s15  ;;  %p273_p0 = scmp.ne.s32.totalorder %s1387_s11, %s1383_s10 }
   0xa   : > { %p261_p1 = scmp.eq.s32.totalorder %s260_s17, 0  ;;  %p274_p2 = scmp.eq.s32.totalorder %s1467_s13, 1 }
   0xb   : > { %p279_p3 = scmp.ne.s32.totalorder %s1383_s10, %s1379_s30  ;;  %p280_p4 = scmp.eq.s32.totalorder %s1259_s14, 1 }
   0xc   : > { %s1482_s18 = scalar_select %p261_p1, %s1387_s11, %s263_s16  }
   0xd   : > { %p1484_p5 = por %p274_p2, %p273_p0  ;;  %p1488_p6 = por %p280_p4, %p279_p3 }
   0xe   : > { %p1262_p7 = scmp.ge.s32.totalorder %s1391_s12, 1  ;;  %p379_p8 = scmp.lt.s32.totalorder %s1391_s12, 3 }
  0x10   : > { %p380_p9 = pnand %p1262_p7, %p379_p8 }
  0x11   : > { %s1264_s21 = sshll.u32 (!%p380_p9), %s1467_s13, 5  ;;  %s1979_s0 = sld [smem:[#allocation5_spill]] (!%p380_p9)  ;;  %vm1054_vm0 = vcmask (!%p380_p9), 519168  }
  0x12   : > { %383 = sbr.rel (%p380_p9) target bundleno = 159 (0x9f), region = 56  ;;  %p456_p10 = scmp.lt.s32.totalorder (!%p380_p9), %s1264_s21, 63 }
  0x13   : > { %s1980_s1 = sld [smem:[#allocation6_spill]] (!%p380_p9)  ;;  %s1981_s2 = sld [smem:[#allocation7_spill]] (!%p380_p9) }
  0x14   : > { %s1973_s29 = sand.u32 (!%p380_p9), 1, %s1383_s10  }
  0x15   : > { %s1545_s24 = sshll.u32 (!%p380_p9), %s1973_s29, 7 }
  0x19   : > { %s1988_s21 = smov (!%p456_p10, %s1264_s21), 63 }
  0x1a   : > { %s1495_s22 = sshll.u32 %s1988_s21, 2 }
  0x1b   : > { %s1501_s25 = scalar_lea.vmem %s1979_s0, %s1495_s22  ;;  %s1507_s28 = scalar_lea.vmem %s1980_s1, %s1495_s22 }
  0x1c   : > { %s1513_s16 = scalar_lea.vmem %s1981_s2, %s1495_s22  ;;  %s1519_s23 = scalar_lea.vmem %s1966_s3, %s1495_s22  ;;  %v510_v0 = vld [vmem:[%s1501_s25] sm:$0xf]  ;;  %v511_v2 = vld [vmem:[%s1501_s25 + $0x4] sm:$0xf]  ;;  %v512_v17 = vld [vmem:[%s1501_s25 + $0x8] sm:$0xf] }
  0x1d   : > { %v542_v1 = vld [vmem:[%s1507_s28] sm:$0xf]  ;;  %s1528_s27 = scalar_lea.vmem %s1967_s4, %s1495_s22  ;;  %v543_v5 = vld [vmem:[%s1507_s28 + $0x4] sm:$0xf]  ;;  %s1537_s21 = scalar_lea.vmem %s1968_s5, %s1495_s22  ;;  %v544_v18 = vld [vmem:[%s1507_s28 + $0x8] sm:$0xf] }
  0x1e   : > { %v574_v3 = vmax.bf16 %v542_v1, %v510_v0  ;;  %v606_v4 = vld [vmem:[%s1513_s16] sm:$0xf]  ;;  %v575_v7 = vmax.bf16 %v543_v5, %v511_v2  ;;  %v607_v8 = vld [vmem:[%s1513_s16 + $0x4] sm:$0xf]  ;;  %s1551_s17 = scalar_lea.vmem %s1969_s6, %s1495_s22  ;;  %v608_v19 = vld [vmem:[%s1513_s16 + $0x8] sm:$0xf]  ;;  %s1562_s1 = scalar_lea.vmem %s1970_s7, %s1495_s22  ;;  %v576_v22 = vmax.bf16 %v544_v18, %v512_v17 }
  0x1f   : > { %v670_v6 = vld [vmem:[%s1519_s23] sm:$0xf]  ;;  %v671_v10 = vld [vmem:[%s1519_s23 + $0x4] sm:$0xf]  ;;  %s1568_s2 = scalar_lea.vmem %s1971_s8, %s1495_s22  ;;  %v672_v26 = vld [vmem:[%s1519_s23 + $0x8] sm:$0xf] }
  0x20   : > { %v638_v9 = vmax.bf16 %v606_v4, %v574_v3  ;;  %v734_v11 = vld [vmem:[%s1528_s27] sm:$0xf]  ;;  %v639_v12 = vmax.bf16 %v607_v8, %v575_v7  ;;  %v735_v15 = vld [vmem:[%s1528_s27 + $0x4] sm:$0xf]  ;;  %v640_v28 = vmax.bf16 %v608_v19, %v576_v22  ;;  %v513_v29 = vld [vmem:[%s1501_s25 + $0xc] sm:$0xf] }
  0x21   : > { %v798_v14 = vld [vmem:[%s1537_s21] sm:$0xf]  ;;  %v799_v21 = vld [vmem:[%s1537_s21 + $0x4] sm:$0xf]  ;;  %v545_v30 = vld [vmem:[%s1507_s28 + $0xc] sm:$0xf] }
  0x22   : > { %v702_v13 = vmax.bf16 %v670_v6, %v638_v9  ;;  %v703_v16 = vmax.bf16 %v671_v10, %v639_v12  ;;  %v862_v23 = vld [vmem:[%s1551_s17] sm:$0xf]  ;;  %v863_v25 = vld [vmem:[%s1551_s17 + $0x4] sm:$0xf]  ;;  %v609_v31 = vld [vmem:[%s1513_s16 + $0xc] sm:$0xf]  ;;  %v577_v36 = vmax.bf16 %v545_v30, %v513_v29  ;;  %v704_v39 = vmax.bf16 %v672_v26, %v640_v28 }
  0x23   : > { %v926_v32 = vld [vmem:[%s1562_s1] sm:$0xf]  ;;  %v736_v35 = vld [vmem:[%s1528_s27 + $0x8] sm:$0xf]  ;;  %v927_v38 = vld [vmem:[%s1562_s1 + $0x4] sm:$0xf] }
  0x24   : > { %v766_v20 = vmax.bf16 %v734_v11, %v702_v13  ;;  %v767_v24 = vmax.bf16 %v735_v15, %v703_v16  ;;  %v990_v33 = vld [vmem:[%s1568_s2] sm:$0xf]  ;;  %v800_v40 = vld [vmem:[%s1537_s21 + $0x8] sm:$0xf]  ;;  %v673_v41 = vld [vmem:[%s1519_s23 + $0xc] sm:$0xf]  ;;  %v641_v43 = vmax.bf16 %v609_v31, %v577_v36  ;;  %v768_v49 = vmax.bf16 %v736_v35, %v704_v39 }
  0x25   : > { %v514_v44 = vld [vmem:[%s1501_s25 + $0x10] sm:$0xf]  ;;  %v991_v48 = vld [vmem:[%s1568_s2 + $0x4] sm:$0xf]  ;;  %v737_v50 = vld [vmem:[%s1528_s27 + $0xc] sm:$0xf] }
  0x26   : > { %v830_v27 = vmax.bf16 %v798_v14, %v766_v20  ;;  %v831_v34 = vmax.bf16 %v799_v21, %v767_v24  ;;  %v546_v45 = vld [vmem:[%s1507_s28 + $0x10] sm:$0xf]  ;;  %v864_v53 = vld [vmem:[%s1551_s17 + $0x8] sm:$0xf]  ;;  %v705_v54 = vmax.bf16 %v673_v41, %v641_v43  ;;  %v801_v55 = vld [vmem:[%s1537_s21 + $0xc] sm:$0xf]  ;;  %v832_v58 = vmax.bf16 %v800_v40, %v768_v49 }
  0x27   : > { %v610_v46 = vld [vmem:[%s1513_s16 + $0x10] sm:$0xf]  ;;  %v578_v51 = vmax.bf16 %v546_v45, %v514_v44  ;;  %v515_v60 = vld [vmem:[%s1501_s25 + $0x14] sm:$0xf]  ;;  %v928_v0 = vld [vmem:[%s1562_s1 + $0x8] sm:$0xf] }
  0x28   : > { %v894_v37 = vmax.bf16 %v862_v23, %v830_v27  ;;  %v895_v42 = vmax.bf16 %v863_v25, %v831_v34  ;;  %v674_v56 = vld [vmem:[%s1519_s23 + $0x10] sm:$0xf]  ;;  %v547_v61 = vld [vmem:[%s1507_s28 + $0x14] sm:$0xf]  ;;  %v992_v1 = vld [vmem:[%s1568_s2 + $0x8] sm:$0xf]  ;;  %v769_v2 = vmax.bf16 %v737_v50, %v705_v54  ;;  %v896_v5 = vmax.bf16 %v864_v53, %v832_v58 }
  0x29   : > { %v642_v59 = vmax.bf16 %v610_v46, %v578_v51  ;;  %v611_v62 = vld [vmem:[%s1513_s16 + $0x14] sm:$0xf]  ;;  %v738_v3 = vld [vmem:[%s1528_s27 + $0x10] sm:$0xf]  ;;  %v579_v4 = vmax.bf16 %v547_v61, %v515_v60  ;;  %s1598_s0 = scalar_lea.vmem [#allocation2], %s1545_s24  ;;  %s1287_s22 = sshll.u32 %s1467_s13, 11 }
  0x2a   : > { %v958_v47 = vmax.bf16 %v926_v32, %v894_v37  ;;  %v959_v52 = vmax.bf16 %v927_v38, %v895_v42  ;;  %v865_v6 = vld [vmem:[%s1551_s17 + $0xc] sm:$0xf]  ;;  %v802_v8 = vld [vmem:[%s1537_s21 + $0x10] sm:$0xf]  ;;  %v675_v9 = vld [vmem:[%s1519_s23 + $0x14] sm:$0xf]  ;;  %v833_v10 = vmax.bf16 %v801_v55, %v769_v2  ;;  %v960_v15 = vmax.bf16 %v928_v0, %v896_v5 }
  0x2b   : > { %v706_v7 = vmax.bf16 %v674_v56, %v642_v59  ;;  %v643_v11 = vmax.bf16 %v611_v62, %v579_v4  ;;  %v516_v12 = vld [vmem:[%s1501_s25 + $0x18] sm:$0xf]  ;;  %v929_v16 = vld [vmem:[%s1562_s1 + $0xc] sm:$0xf]  ;;  %v739_v19 = vld [vmem:[%s1528_s27 + $0x14] sm:$0xf] }
  0x2c   : > { %v1022_v57 = vmax.bf16 %v990_v33, %v958_v47  ;;  %v1023_v63 = vmax.bf16 %v991_v48, %v959_v52  ;;  %v548_v13 = vld [vmem:[%s1507_s28 + $0x18] sm:$0xf]  ;;  %v993_v17 = vld [vmem:[%s1568_s2 + $0xc] sm:$0xf]  ;;  %v897_v21 = vmax.bf16 %v865_v6, %v833_v10  ;;  %v866_v22 = vld [vmem:[%s1551_s17 + $0x10] sm:$0xf]  ;;  %v1024_v26 = vmax.bf16 %v992_v1, %v960_v15 }
  0x2d   : > { %v612_v14 = vld [vmem:[%s1513_s16 + $0x18] sm:$0xf]  ;;  %v770_v18 = vmax.bf16 %v738_v3, %v706_v7  ;;  %v580_v20 = vmax.bf16 %v548_v13, %v516_v12  ;;  %v707_v23 = vmax.bf16 %v675_v9, %v643_v11  ;;  %v803_v24 = vld [vmem:[%s1537_s21 + $0x14] sm:$0xf]  ;;  %v517_v29 = vld [vmem:[%s1501_s25 + $0x1c] sm:$0xf] }
  0x2e   : > { %1055 = vst.msk [vmem:[%s1598_s0] sm:$0xf] %vm1054_vm0, %v1022_v57  ;;  %1056 = vst.msk [vmem:[%s1598_s0 + $0x4] sm:$0xf] %vm1054_vm0, %v1023_v63  ;;  %v676_v25 = vld [vmem:[%s1519_s23 + $0x18] sm:$0xf]  ;;  %v961_v32 = vmax.bf16 %v929_v16, %v897_v21 }
  0x2f   : > { %v834_v27 = vmax.bf16 %v802_v8, %v770_v18  ;;  %v644_v28 = vmax.bf16 %v612_v14, %v580_v20  ;;  %v549_v30 = vld [vmem:[%s1507_s28 + $0x1c] sm:$0xf]  ;;  %v930_v33 = vld [vmem:[%s1562_s1 + $0x10] sm:$0xf]  ;;  %v771_v35 = vmax.bf16 %v739_v19, %v707_v23  ;;  %v740_v36 = vld [vmem:[%s1528_s27 + $0x18] sm:$0xf] }
  0x30   : > { %v613_v31 = vld [vmem:[%s1513_s16 + $0x1c] sm:$0xf]  ;;  %v994_v34 = vld [vmem:[%s1568_s2 + $0x10] sm:$0xf]  ;;  %v581_v37 = vmax.bf16 %v549_v30, %v517_v29  ;;  %1057 = vst.msk [vmem:[%s1598_s0 + $0x8] sm:$0xf] %vm1054_vm0, %v1024_v26  ;;  %v1025_v43 = vmax.bf16 %v993_v17, %v961_v32 }
  0x31   : > { %v898_v38 = vmax.bf16 %v866_v22, %v834_v27  ;;  %v867_v39 = vld [vmem:[%s1551_s17 + $0x14] sm:$0xf]  ;;  %v708_v40 = vmax.bf16 %v676_v25, %v644_v28  ;;  %v804_v41 = vld [vmem:[%s1537_s21 + $0x18] sm:$0xf]  ;;  %v677_v42 = vld [vmem:[%s1519_s23 + $0x1c] sm:$0xf]  ;;  %v835_v44 = vmax.bf16 %v803_v24, %v771_v35 }
  0x32   : > { %v645_v45 = vmax.bf16 %v613_v31, %v581_v37  ;;  %v518_v46 = vld [vmem:[%s1501_s25 + $0x20] sm:$0xf]  ;;  %v931_v50 = vld [vmem:[%s1562_s1 + $0x14] sm:$0xf]  ;;  %v741_v53 = vld [vmem:[%s1528_s27 + $0x1c] sm:$0xf] }
  0x33   : > { %v550_v47 = vld [vmem:[%s1507_s28 + $0x20] sm:$0xf]  ;;  %v962_v49 = vmax.bf16 %v930_v33, %v898_v38  ;;  %v995_v51 = vld [vmem:[%s1568_s2 + $0x14] sm:$0xf]  ;;  %v772_v52 = vmax.bf16 %v740_v36, %v708_v40  ;;  %1058 = vst.msk [vmem:[%s1598_s0 + $0xc] sm:$0xf] %vm1054_vm0, %v1025_v43  ;;  %v899_v55 = vmax.bf16 %v867_v39, %v835_v44 }
  0x34   : > { %v614_v48 = vld [vmem:[%s1513_s16 + $0x20] sm:$0xf]  ;;  %v582_v54 = vmax.bf16 %v550_v47, %v518_v46  ;;  %v868_v56 = vld [vmem:[%s1551_s17 + $0x18] sm:$0xf]  ;;  %v709_v57 = vmax.bf16 %v677_v42, %v645_v45  ;;  %v805_v58 = vld [vmem:[%s1537_s21 + $0x1c] sm:$0xf] }
  0x35   : > { %v678_v59 = vld [vmem:[%s1519_s23 + $0x20] sm:$0xf]  ;;  %v1026_v60 = vmax.bf16 %v994_v34, %v962_v49  ;;  %v836_v61 = vmax.bf16 %v804_v41, %v772_v52  ;;  %v519_v63 = vld [vmem:[%s1501_s25 + $0x24] sm:$0xf]  ;;  %v963_v2 = vmax.bf16 %v931_v50, %v899_v55  ;;  %v932_v3 = vld [vmem:[%s1562_s1 + $0x18] sm:$0xf] }
  0x36   : > { %v646_v62 = vmax.bf16 %v614_v48, %v582_v54  ;;  %v551_v0 = vld [vmem:[%s1507_s28 + $0x24] sm:$0xf]  ;;  %v996_v4 = vld [vmem:[%s1568_s2 + $0x18] sm:$0xf]  ;;  %v773_v5 = vmax.bf16 %v741_v53, %v709_v57  ;;  %v742_v6 = vld [vmem:[%s1528_s27 + $0x20] sm:$0xf] }
  0x37   : > { %v615_v1 = vld [vmem:[%s1513_s16 + $0x24] sm:$0xf]  ;;  %v583_v7 = vmax.bf16 %v551_v0, %v519_v63  ;;  %1059 = vst.msk [vmem:[%s1598_s0 + $0x10] sm:$0xf] %vm1054_vm0, %v1026_v60  ;;  %v900_v8 = vmax.bf16 %v868_v56, %v836_v61  ;;  %v869_v9 = vld [vmem:[%s1551_s17 + $0x1c] sm:$0xf]  ;;  %v1027_v13 = vmax.bf16 %v995_v51, %v963_v2 }
  0x38   : > { %v710_v10 = vmax.bf16 %v678_v59, %v646_v62  ;;  %v806_v11 = vld [vmem:[%s1537_s21 + $0x20] sm:$0xf]  ;;  %v679_v12 = vld [vmem:[%s1519_s23 + $0x24] sm:$0xf]  ;;  %v837_v14 = vmax.bf16 %v805_v58, %v773_v5  ;;  %v520_v16 = vld [vmem:[%s1501_s25 + $0x28] sm:$0xf] }
  0x39   : > { %v647_v15 = vmax.bf16 %v615_v1, %v583_v7  ;;  %v552_v17 = vld [vmem:[%s1507_s28 + $0x28] sm:$0xf]  ;;  %v964_v19 = vmax.bf16 %v932_v3, %v900_v8  ;;  %v933_v20 = vld [vmem:[%s1562_s1 + $0x1c] sm:$0xf]  ;;  %v743_v23 = vld [vmem:[%s1528_s27 + $0x24] sm:$0xf] }
  0x3a   : > { %v616_v18 = vld [vmem:[%s1513_s16 + $0x28] sm:$0xf]  ;;  %v997_v21 = vld [vmem:[%s1568_s2 + $0x1c] sm:$0xf]  ;;  %v774_v22 = vmax.bf16 %v742_v6, %v710_v10  ;;  %v584_v24 = vmax.bf16 %v552_v17, %v520_v16  ;;  %1060 = vst.msk [vmem:[%s1598_s0 + $0x14] sm:$0xf] %vm1054_vm0, %v1027_v13  ;;  %v901_v25 = vmax.bf16 %v869_v9, %v837_v14 }
  0x3b   : > { %v870_v26 = vld [vmem:[%s1551_s17 + $0x20] sm:$0xf]  ;;  %v711_v27 = vmax.bf16 %v679_v12, %v647_v15  ;;  %v807_v28 = vld [vmem:[%s1537_s21 + $0x24] sm:$0xf]  ;;  %v680_v29 = vld [vmem:[%s1519_s23 + $0x28] sm:$0xf]  ;;  %v1028_v30 = vmax.bf16 %v996_v4, %v964_v19 }
  0x3c   : > { %v838_v31 = vmax.bf16 %v806_v11, %v774_v22  ;;  %v648_v32 = vmax.bf16 %v616_v18, %v584_v24  ;;  %v521_v33 = vld [vmem:[%s1501_s25 + $0x2c] sm:$0xf]  ;;  %v965_v36 = vmax.bf16 %v933_v20, %v901_v25  ;;  %v934_v37 = vld [vmem:[%s1562_s1 + $0x20] sm:$0xf]  ;;  %v744_v40 = vld [vmem:[%s1528_s27 + $0x28] sm:$0xf] }
  0x3d   : > { %v553_v34 = vld [vmem:[%s1507_s28 + $0x2c] sm:$0xf]  ;;  %v998_v38 = vld [vmem:[%s1568_s2 + $0x20] sm:$0xf]  ;;  %v775_v39 = vmax.bf16 %v743_v23, %v711_v27  ;;  %1061 = vst.msk [vmem:[%s1598_s0 + $0x18] sm:$0xf] %vm1054_vm0, %v1028_v30 }
  0x3e   : > { %v617_v35 = vld [vmem:[%s1513_s16 + $0x2c] sm:$0xf]  ;;  %v585_v41 = vmax.bf16 %v553_v34, %v521_v33  ;;  %v902_v42 = vmax.bf16 %v870_v26, %v838_v31  ;;  %v871_v43 = vld [vmem:[%s1551_s17 + $0x24] sm:$0xf]  ;;  %v712_v44 = vmax.bf16 %v680_v29, %v648_v32  ;;  %v808_v45 = vld [vmem:[%s1537_s21 + $0x28] sm:$0xf]  ;;  %v1029_v47 = vmax.bf16 %v997_v21, %v965_v36 }
  0x3f   : > { %v681_v46 = vld [vmem:[%s1519_s23 + $0x2c] sm:$0xf]  ;;  %v839_v48 = vmax.bf16 %v807_v28, %v775_v39  ;;  %v522_v50 = vld [vmem:[%s1501_s25 + $0x30] sm:$0xf]  ;;  %v935_v54 = vld [vmem:[%s1562_s1 + $0x24] sm:$0xf] }
  0x40   : > { %v649_v49 = vmax.bf16 %v617_v35, %v585_v41  ;;  %v554_v51 = vld [vmem:[%s1507_s28 + $0x30] sm:$0xf]  ;;  %v966_v53 = vmax.bf16 %v934_v37, %v902_v42  ;;  %v999_v55 = vld [vmem:[%s1568_s2 + $0x24] sm:$0xf]  ;;  %v776_v56 = vmax.bf16 %v744_v40, %v712_v44  ;;  %v745_v57 = vld [vmem:[%s1528_s27 + $0x2c] sm:$0xf] }
  0x41   : > { %v618_v52 = vld [vmem:[%s1513_s16 + $0x30] sm:$0xf]  ;;  %v586_v58 = vmax.bf16 %v554_v51, %v522_v50  ;;  %1062 = vst.msk [vmem:[%s1598_s0 + $0x1c] sm:$0xf] %vm1054_vm0, %v1029_v47  ;;  %v903_v59 = vmax.bf16 %v871_v43, %v839_v48  ;;  %v872_v60 = vld [vmem:[%s1551_s17 + $0x28] sm:$0xf] }
  0x42   : > { %v713_v61 = vmax.bf16 %v681_v46, %v649_v49  ;;  %v809_v62 = vld [vmem:[%s1537_s21 + $0x2c] sm:$0xf]  ;;  %v682_v63 = vld [vmem:[%s1519_s23 + $0x30] sm:$0xf]  ;;  %v1030_v0 = vmax.bf16 %v998_v38, %v966_v53  ;;  %v840_v1 = vmax.bf16 %v808_v45, %v776_v56  ;;  %v523_v3 = vld [vmem:[%s1501_s25 + $0x34] sm:$0xf] }
  0x43   : > { %v650_v2 = vmax.bf16 %v618_v52, %v586_v58  ;;  %v555_v4 = vld [vmem:[%s1507_s28 + $0x34] sm:$0xf]  ;;  %v967_v6 = vmax.bf16 %v935_v54, %v903_v59  ;;  %v936_v7 = vld [vmem:[%s1562_s1 + $0x28] sm:$0xf]  ;;  %v746_v10 = vld [vmem:[%s1528_s27 + $0x30] sm:$0xf] }
  0x44   : > { %v619_v5 = vld [vmem:[%s1513_s16 + $0x34] sm:$0xf]  ;;  %v1000_v8 = vld [vmem:[%s1568_s2 + $0x28] sm:$0xf]  ;;  %v777_v9 = vmax.bf16 %v745_v57, %v713_v61  ;;  %v587_v11 = vmax.bf16 %v555_v4, %v523_v3  ;;  %1063 = vst.msk [vmem:[%s1598_s0 + $0x20] sm:$0xf] %vm1054_vm0, %v1030_v0  ;;  %v904_v12 = vmax.bf16 %v872_v60, %v840_v1 }
  0x45   : > { %v873_v13 = vld [vmem:[%s1551_s17 + $0x2c] sm:$0xf]  ;;  %v714_v14 = vmax.bf16 %v682_v63, %v650_v2  ;;  %v810_v15 = vld [vmem:[%s1537_s21 + $0x30] sm:$0xf]  ;;  %v683_v16 = vld [vmem:[%s1519_s23 + $0x34] sm:$0xf]  ;;  %v1031_v17 = vmax.bf16 %v999_v55, %v967_v6 }
  0x46   : > { %v841_v18 = vmax.bf16 %v809_v62, %v777_v9  ;;  %v651_v19 = vmax.bf16 %v619_v5, %v587_v11  ;;  %v524_v20 = vld [vmem:[%s1501_s25 + $0x38] sm:$0xf]  ;;  %v968_v23 = vmax.bf16 %v936_v7, %v904_v12  ;;  %v937_v24 = vld [vmem:[%s1562_s1 + $0x2c] sm:$0xf]  ;;  %v747_v27 = vld [vmem:[%s1528_s27 + $0x34] sm:$0xf] }
  0x47   : > { %v556_v21 = vld [vmem:[%s1507_s28 + $0x38] sm:$0xf]  ;;  %v1001_v25 = vld [vmem:[%s1568_s2 + $0x2c] sm:$0xf]  ;;  %v778_v26 = vmax.bf16 %v746_v10, %v714_v14  ;;  %1064 = vst.msk [vmem:[%s1598_s0 + $0x24] sm:$0xf] %vm1054_vm0, %v1031_v17 }
  0x48   : > { %v620_v22 = vld [vmem:[%s1513_s16 + $0x38] sm:$0xf]  ;;  %v588_v28 = vmax.bf16 %v556_v21, %v524_v20  ;;  %v905_v29 = vmax.bf16 %v873_v13, %v841_v18  ;;  %v874_v30 = vld [vmem:[%s1551_s17 + $0x30] sm:$0xf]  ;;  %v715_v31 = vmax.bf16 %v683_v16, %v651_v19  ;;  %v811_v32 = vld [vmem:[%s1537_s21 + $0x34] sm:$0xf]  ;;  %v1032_v34 = vmax.bf16 %v1000_v8, %v968_v23 }
  0x49   : > { %v684_v33 = vld [vmem:[%s1519_s23 + $0x38] sm:$0xf]  ;;  %v842_v35 = vmax.bf16 %v810_v15, %v778_v26  ;;  %v525_v37 = vld [vmem:[%s1501_s25 + $0x3c] sm:$0xf]  ;;  %v938_v41 = vld [vmem:[%s1562_s1 + $0x30] sm:$0xf] }
  0x4a   : > { %v652_v36 = vmax.bf16 %v620_v22, %v588_v28  ;;  %v557_v38 = vld [vmem:[%s1507_s28 + $0x3c] sm:$0xf]  ;;  %v969_v40 = vmax.bf16 %v937_v24, %v905_v29  ;;  %v1002_v42 = vld [vmem:[%s1568_s2 + $0x30] sm:$0xf]  ;;  %v779_v43 = vmax.bf16 %v747_v27, %v715_v31  ;;  %v748_v44 = vld [vmem:[%s1528_s27 + $0x38] sm:$0xf] }
  0x4b   : > { %v621_v39 = vld [vmem:[%s1513_s16 + $0x3c] sm:$0xf]  ;;  %v589_v45 = vmax.bf16 %v557_v38, %v525_v37  ;;  %1065 = vst.msk [vmem:[%s1598_s0 + $0x28] sm:$0xf] %vm1054_vm0, %v1032_v34  ;;  %v906_v46 = vmax.bf16 %v874_v30, %v842_v35  ;;  %v875_v47 = vld [vmem:[%s1551_s17 + $0x34] sm:$0xf] }
  0x4c   : > { %v716_v48 = vmax.bf16 %v684_v33, %v652_v36  ;;  %v812_v49 = vld [vmem:[%s1537_s21 + $0x38] sm:$0xf]  ;;  %v685_v50 = vld [vmem:[%s1519_s23 + $0x3c] sm:$0xf]  ;;  %v1033_v51 = vmax.bf16 %v1001_v25, %v969_v40  ;;  %v843_v52 = vmax.bf16 %v811_v32, %v779_v43  ;;  %v526_v54 = vld [vmem:[%s1501_s25 + $0x40] sm:$0xf] }
  0x4d   : > { %v653_v53 = vmax.bf16 %v621_v39, %v589_v45  ;;  %v558_v55 = vld [vmem:[%s1507_s28 + $0x40] sm:$0xf]  ;;  %v970_v57 = vmax.bf16 %v938_v41, %v906_v46  ;;  %v939_v58 = vld [vmem:[%s1562_s1 + $0x34] sm:$0xf]  ;;  %v749_v61 = vld [vmem:[%s1528_s27 + $0x3c] sm:$0xf] }
  0x4e   : > { %v622_v56 = vld [vmem:[%s1513_s16 + $0x40] sm:$0xf]  ;;  %v1003_v59 = vld [vmem:[%s1568_s2 + $0x34] sm:$0xf]  ;;  %v780_v60 = vmax.bf16 %v748_v44, %v716_v48  ;;  %v590_v62 = vmax.bf16 %v558_v55, %v526_v54  ;;  %1066 = vst.msk [vmem:[%s1598_s0 + $0x2c] sm:$0xf] %vm1054_vm0, %v1033_v51  ;;  %v907_v63 = vmax.bf16 %v875_v47, %v843_v52 }
  0x4f   : > { %v876_v0 = vld [vmem:[%s1551_s17 + $0x38] sm:$0xf]  ;;  %v717_v1 = vmax.bf16 %v685_v50, %v653_v53  ;;  %v813_v2 = vld [vmem:[%s1537_s21 + $0x3c] sm:$0xf]  ;;  %v686_v3 = vld [vmem:[%s1519_s23 + $0x40] sm:$0xf]  ;;  %v1034_v4 = vmax.bf16 %v1002_v42, %v970_v57 }
  0x50   : > { %v844_v5 = vmax.bf16 %v812_v49, %v780_v60  ;;  %v654_v6 = vmax.bf16 %v622_v56, %v590_v62  ;;  %v527_v7 = vld [vmem:[%s1501_s25 + $0x44] sm:$0xf]  ;;  %v971_v10 = vmax.bf16 %v939_v58, %v907_v63  ;;  %v940_v11 = vld [vmem:[%s1562_s1 + $0x38] sm:$0xf]  ;;  %v750_v14 = vld [vmem:[%s1528_s27 + $0x40] sm:$0xf] }
  0x51   : > { %v559_v8 = vld [vmem:[%s1507_s28 + $0x44] sm:$0xf]  ;;  %v1004_v12 = vld [vmem:[%s1568_s2 + $0x38] sm:$0xf]  ;;  %v781_v13 = vmax.bf16 %v749_v61, %v717_v1  ;;  %1067 = vst.msk [vmem:[%s1598_s0 + $0x30] sm:$0xf] %vm1054_vm0, %v1034_v4 }
  0x52   : > { %v623_v9 = vld [vmem:[%s1513_s16 + $0x44] sm:$0xf]  ;;  %v591_v15 = vmax.bf16 %v559_v8, %v527_v7  ;;  %v908_v16 = vmax.bf16 %v876_v0, %v844_v5  ;;  %v877_v17 = vld [vmem:[%s1551_s17 + $0x3c] sm:$0xf]  ;;  %v718_v18 = vmax.bf16 %v686_v3, %v654_v6  ;;  %v814_v19 = vld [vmem:[%s1537_s21 + $0x40] sm:$0xf]  ;;  %v1035_v21 = vmax.bf16 %v1003_v59, %v971_v10 }
  0x53   : > { %v687_v20 = vld [vmem:[%s1519_s23 + $0x44] sm:$0xf]  ;;  %v845_v22 = vmax.bf16 %v813_v2, %v781_v13  ;;  %v528_v24 = vld [vmem:[%s1501_s25 + $0x48] sm:$0xf]  ;;  %v941_v28 = vld [vmem:[%s1562_s1 + $0x3c] sm:$0xf] }
  0x54   : > { %v655_v23 = vmax.bf16 %v623_v9, %v591_v15  ;;  %v560_v25 = vld [vmem:[%s1507_s28 + $0x48] sm:$0xf]  ;;  %v972_v27 = vmax.bf16 %v940_v11, %v908_v16  ;;  %v1005_v29 = vld [vmem:[%s1568_s2 + $0x3c] sm:$0xf]  ;;  %v782_v30 = vmax.bf16 %v750_v14, %v718_v18  ;;  %v751_v31 = vld [vmem:[%s1528_s27 + $0x44] sm:$0xf] }
  0x55   : > { %v624_v26 = vld [vmem:[%s1513_s16 + $0x48] sm:$0xf]  ;;  %v592_v32 = vmax.bf16 %v560_v25, %v528_v24  ;;  %1068 = vst.msk [vmem:[%s1598_s0 + $0x34] sm:$0xf] %vm1054_vm0, %v1035_v21  ;;  %v909_v33 = vmax.bf16 %v877_v17, %v845_v22  ;;  %v878_v34 = vld [vmem:[%s1551_s17 + $0x40] sm:$0xf] }
  0x56   : > { %v719_v35 = vmax.bf16 %v687_v20, %v655_v23  ;;  %v815_v36 = vld [vmem:[%s1537_s21 + $0x44] sm:$0xf]  ;;  %v688_v37 = vld [vmem:[%s1519_s23 + $0x48] sm:$0xf]  ;;  %v1036_v38 = vmax.bf16 %v1004_v12, %v972_v27  ;;  %v846_v39 = vmax.bf16 %v814_v19, %v782_v30  ;;  %v529_v41 = vld [vmem:[%s1501_s25 + $0x4c] sm:$0xf] }
  0x57   : > { %v656_v40 = vmax.bf16 %v624_v26, %v592_v32  ;;  %v561_v42 = vld [vmem:[%s1507_s28 + $0x4c] sm:$0xf]  ;;  %v973_v44 = vmax.bf16 %v941_v28, %v909_v33  ;;  %v942_v45 = vld [vmem:[%s1562_s1 + $0x40] sm:$0xf]  ;;  %v752_v48 = vld [vmem:[%s1528_s27 + $0x48] sm:$0xf] }
  0x58   : > { %v625_v43 = vld [vmem:[%s1513_s16 + $0x4c] sm:$0xf]  ;;  %v1006_v46 = vld [vmem:[%s1568_s2 + $0x40] sm:$0xf]  ;;  %v783_v47 = vmax.bf16 %v751_v31, %v719_v35  ;;  %v593_v49 = vmax.bf16 %v561_v42, %v529_v41  ;;  %1069 = vst.msk [vmem:[%s1598_s0 + $0x38] sm:$0xf] %vm1054_vm0, %v1036_v38  ;;  %v910_v50 = vmax.bf16 %v878_v34, %v846_v39 }
  0x59   : > { %v879_v51 = vld [vmem:[%s1551_s17 + $0x44] sm:$0xf]  ;;  %v720_v52 = vmax.bf16 %v688_v37, %v656_v40  ;;  %v816_v53 = vld [vmem:[%s1537_s21 + $0x48] sm:$0xf]  ;;  %v689_v54 = vld [vmem:[%s1519_s23 + $0x4c] sm:$0xf]  ;;  %v1037_v55 = vmax.bf16 %v1005_v29, %v973_v44 }
  0x5a   : > { %v847_v56 = vmax.bf16 %v815_v36, %v783_v47  ;;  %v657_v57 = vmax.bf16 %v625_v43, %v593_v49  ;;  %v530_v58 = vld [vmem:[%s1501_s25 + $0x50] sm:$0xf]  ;;  %v974_v61 = vmax.bf16 %v942_v45, %v910_v50  ;;  %v943_v62 = vld [vmem:[%s1562_s1 + $0x44] sm:$0xf]  ;;  %v753_v1 = vld [vmem:[%s1528_s27 + $0x4c] sm:$0xf] }
  0x5b   : > { %v562_v59 = vld [vmem:[%s1507_s28 + $0x50] sm:$0xf]  ;;  %v1007_v63 = vld [vmem:[%s1568_s2 + $0x44] sm:$0xf]  ;;  %v784_v0 = vmax.bf16 %v752_v48, %v720_v52  ;;  %1070 = vst.msk [vmem:[%s1598_s0 + $0x3c] sm:$0xf] %vm1054_vm0, %v1037_v55 }
  0x5c   : > { %v626_v60 = vld [vmem:[%s1513_s16 + $0x50] sm:$0xf]  ;;  %v594_v2 = vmax.bf16 %v562_v59, %v530_v58  ;;  %v911_v3 = vmax.bf16 %v879_v51, %v847_v56  ;;  %v880_v4 = vld [vmem:[%s1551_s17 + $0x48] sm:$0xf]  ;;  %v721_v5 = vmax.bf16 %v689_v54, %v657_v57  ;;  %v817_v6 = vld [vmem:[%s1537_s21 + $0x4c] sm:$0xf]  ;;  %v1038_v8 = vmax.bf16 %v1006_v46, %v974_v61 }
  0x5d   : > { %v690_v7 = vld [vmem:[%s1519_s23 + $0x50] sm:$0xf]  ;;  %v848_v9 = vmax.bf16 %v816_v53, %v784_v0  ;;  %v531_v11 = vld [vmem:[%s1501_s25 + $0x54] sm:$0xf]  ;;  %v944_v15 = vld [vmem:[%s1562_s1 + $0x48] sm:$0xf] }
  0x5e   : > { %v658_v10 = vmax.bf16 %v626_v60, %v594_v2  ;;  %v563_v12 = vld [vmem:[%s1507_s28 + $0x54] sm:$0xf]  ;;  %v975_v14 = vmax.bf16 %v943_v62, %v911_v3  ;;  %v1008_v16 = vld [vmem:[%s1568_s2 + $0x48] sm:$0xf]  ;;  %v785_v17 = vmax.bf16 %v753_v1, %v721_v5  ;;  %v754_v18 = vld [vmem:[%s1528_s27 + $0x50] sm:$0xf] }
  0x5f   : > { %v627_v13 = vld [vmem:[%s1513_s16 + $0x54] sm:$0xf]  ;;  %v595_v19 = vmax.bf16 %v563_v12, %v531_v11  ;;  %1071 = vst.msk [vmem:[%s1598_s0 + $0x40] sm:$0xf] %vm1054_vm0, %v1038_v8  ;;  %v912_v20 = vmax.bf16 %v880_v4, %v848_v9  ;;  %v881_v21 = vld [vmem:[%s1551_s17 + $0x4c] sm:$0xf] }
  0x60   : > { %v722_v22 = vmax.bf16 %v690_v7, %v658_v10  ;;  %v818_v23 = vld [vmem:[%s1537_s21 + $0x50] sm:$0xf]  ;;  %v691_v24 = vld [vmem:[%s1519_s23 + $0x54] sm:$0xf]  ;;  %v1039_v25 = vmax.bf16 %v1007_v63, %v975_v14  ;;  %v849_v26 = vmax.bf16 %v817_v6, %v785_v17  ;;  %v532_v28 = vld [vmem:[%s1501_s25 + $0x58] sm:$0xf] }
  0x61   : > { %v659_v27 = vmax.bf16 %v627_v13, %v595_v19  ;;  %v564_v29 = vld [vmem:[%s1507_s28 + $0x58] sm:$0xf]  ;;  %v976_v31 = vmax.bf16 %v944_v15, %v912_v20  ;;  %v945_v32 = vld [vmem:[%s1562_s1 + $0x4c] sm:$0xf]  ;;  %v755_v35 = vld [vmem:[%s1528_s27 + $0x54] sm:$0xf] }
  0x62   : > { %v628_v30 = vld [vmem:[%s1513_s16 + $0x58] sm:$0xf]  ;;  %v1009_v33 = vld [vmem:[%s1568_s2 + $0x4c] sm:$0xf]  ;;  %v786_v34 = vmax.bf16 %v754_v18, %v722_v22  ;;  %v596_v36 = vmax.bf16 %v564_v29, %v532_v28  ;;  %1072 = vst.msk [vmem:[%s1598_s0 + $0x44] sm:$0xf] %vm1054_vm0, %v1039_v25  ;;  %v913_v37 = vmax.bf16 %v881_v21, %v849_v26 }
  0x63   : > { %v882_v38 = vld [vmem:[%s1551_s17 + $0x50] sm:$0xf]  ;;  %v723_v39 = vmax.bf16 %v691_v24, %v659_v27  ;;  %v819_v40 = vld [vmem:[%s1537_s21 + $0x54] sm:$0xf]  ;;  %v692_v41 = vld [vmem:[%s1519_s23 + $0x58] sm:$0xf]  ;;  %v1040_v42 = vmax.bf16 %v1008_v16, %v976_v31 }
  0x64   : > { %v850_v43 = vmax.bf16 %v818_v23, %v786_v34  ;;  %v660_v44 = vmax.bf16 %v628_v30, %v596_v36  ;;  %v533_v45 = vld [vmem:[%s1501_s25 + $0x5c] sm:$0xf]  ;;  %v977_v48 = vmax.bf16 %v945_v32, %v913_v37  ;;  %v946_v49 = vld [vmem:[%s1562_s1 + $0x50] sm:$0xf]  ;;  %v756_v52 = vld [vmem:[%s1528_s27 + $0x58] sm:$0xf] }
  0x65   : > { %v565_v46 = vld [vmem:[%s1507_s28 + $0x5c] sm:$0xf]  ;;  %v1010_v50 = vld [vmem:[%s1568_s2 + $0x50] sm:$0xf]  ;;  %v787_v51 = vmax.bf16 %v755_v35, %v723_v39  ;;  %1073 = vst.msk [vmem:[%s1598_s0 + $0x48] sm:$0xf] %vm1054_vm0, %v1040_v42 }
  0x66   : > { %v629_v47 = vld [vmem:[%s1513_s16 + $0x5c] sm:$0xf]  ;;  %v597_v53 = vmax.bf16 %v565_v46, %v533_v45  ;;  %v914_v54 = vmax.bf16 %v882_v38, %v850_v43  ;;  %v883_v55 = vld [vmem:[%s1551_s17 + $0x54] sm:$0xf]  ;;  %v724_v56 = vmax.bf16 %v692_v41, %v660_v44  ;;  %v820_v57 = vld [vmem:[%s1537_s21 + $0x58] sm:$0xf]  ;;  %v1041_v59 = vmax.bf16 %v1009_v33, %v977_v48 }
  0x67   : > { %v693_v58 = vld [vmem:[%s1519_s23 + $0x5c] sm:$0xf]  ;;  %v851_v60 = vmax.bf16 %v819_v40, %v787_v51  ;;  %v534_v62 = vld [vmem:[%s1501_s25 + $0x60] sm:$0xf]  ;;  %v947_v2 = vld [vmem:[%s1562_s1 + $0x54] sm:$0xf] }
  0x68   : > { %v661_v61 = vmax.bf16 %v629_v47, %v597_v53  ;;  %v566_v63 = vld [vmem:[%s1507_s28 + $0x60] sm:$0xf]  ;;  %v978_v1 = vmax.bf16 %v946_v49, %v914_v54  ;;  %v1011_v3 = vld [vmem:[%s1568_s2 + $0x54] sm:$0xf]  ;;  %v788_v4 = vmax.bf16 %v756_v52, %v724_v56  ;;  %v757_v5 = vld [vmem:[%s1528_s27 + $0x5c] sm:$0xf] }
  0x69   : > { %v630_v0 = vld [vmem:[%s1513_s16 + $0x60] sm:$0xf]  ;;  %v598_v6 = vmax.bf16 %v566_v63, %v534_v62  ;;  %1074 = vst.msk [vmem:[%s1598_s0 + $0x4c] sm:$0xf] %vm1054_vm0, %v1041_v59  ;;  %v915_v7 = vmax.bf16 %v883_v55, %v851_v60  ;;  %v884_v8 = vld [vmem:[%s1551_s17 + $0x58] sm:$0xf] }
  0x6a   : > { %v725_v9 = vmax.bf16 %v693_v58, %v661_v61  ;;  %v821_v10 = vld [vmem:[%s1537_s21 + $0x5c] sm:$0xf]  ;;  %v694_v11 = vld [vmem:[%s1519_s23 + $0x60] sm:$0xf]  ;;  %v1042_v12 = vmax.bf16 %v1010_v50, %v978_v1  ;;  %v852_v13 = vmax.bf16 %v820_v57, %v788_v4  ;;  %v535_v15 = vld [vmem:[%s1501_s25 + $0x64] sm:$0xf] }
  0x6b   : > { %v662_v14 = vmax.bf16 %v630_v0, %v598_v6  ;;  %v567_v16 = vld [vmem:[%s1507_s28 + $0x64] sm:$0xf]  ;;  %v979_v18 = vmax.bf16 %v947_v2, %v915_v7  ;;  %v948_v19 = vld [vmem:[%s1562_s1 + $0x58] sm:$0xf]  ;;  %v758_v22 = vld [vmem:[%s1528_s27 + $0x60] sm:$0xf] }
  0x6c   : > { %v631_v17 = vld [vmem:[%s1513_s16 + $0x64] sm:$0xf]  ;;  %v1012_v20 = vld [vmem:[%s1568_s2 + $0x58] sm:$0xf]  ;;  %v789_v21 = vmax.bf16 %v757_v5, %v725_v9  ;;  %v599_v23 = vmax.bf16 %v567_v16, %v535_v15  ;;  %1075 = vst.msk [vmem:[%s1598_s0 + $0x50] sm:$0xf] %vm1054_vm0, %v1042_v12  ;;  %v916_v24 = vmax.bf16 %v884_v8, %v852_v13 }
  0x6d   : > { %v885_v25 = vld [vmem:[%s1551_s17 + $0x5c] sm:$0xf]  ;;  %v726_v26 = vmax.bf16 %v694_v11, %v662_v14  ;;  %v822_v27 = vld [vmem:[%s1537_s21 + $0x60] sm:$0xf]  ;;  %v695_v28 = vld [vmem:[%s1519_s23 + $0x64] sm:$0xf]  ;;  %v1043_v29 = vmax.bf16 %v1011_v3, %v979_v18 }
  0x6e   : > { %v853_v30 = vmax.bf16 %v821_v10, %v789_v21  ;;  %v663_v31 = vmax.bf16 %v631_v17, %v599_v23  ;;  %v536_v32 = vld [vmem:[%s1501_s25 + $0x68] sm:$0xf]  ;;  %v980_v35 = vmax.bf16 %v948_v19, %v916_v24  ;;  %v949_v36 = vld [vmem:[%s1562_s1 + $0x5c] sm:$0xf]  ;;  %v759_v39 = vld [vmem:[%s1528_s27 + $0x64] sm:$0xf] }
  0x6f   : > { %v568_v33 = vld [vmem:[%s1507_s28 + $0x68] sm:$0xf]  ;;  %v1013_v37 = vld [vmem:[%s1568_s2 + $0x5c] sm:$0xf]  ;;  %v790_v38 = vmax.bf16 %v758_v22, %v726_v26  ;;  %1076 = vst.msk [vmem:[%s1598_s0 + $0x54] sm:$0xf] %vm1054_vm0, %v1043_v29 }
  0x70   : > { %v632_v34 = vld [vmem:[%s1513_s16 + $0x68] sm:$0xf]  ;;  %v600_v40 = vmax.bf16 %v568_v33, %v536_v32  ;;  %v917_v41 = vmax.bf16 %v885_v25, %v853_v30  ;;  %v886_v42 = vld [vmem:[%s1551_s17 + $0x60] sm:$0xf]  ;;  %v727_v43 = vmax.bf16 %v695_v28, %v663_v31  ;;  %v823_v44 = vld [vmem:[%s1537_s21 + $0x64] sm:$0xf]  ;;  %v1044_v46 = vmax.bf16 %v1012_v20, %v980_v35 }
  0x71   : > { %v696_v45 = vld [vmem:[%s1519_s23 + $0x68] sm:$0xf]  ;;  %v854_v47 = vmax.bf16 %v822_v27, %v790_v38  ;;  %v537_v49 = vld [vmem:[%s1501_s25 + $0x6c] sm:$0xf]  ;;  %v950_v53 = vld [vmem:[%s1562_s1 + $0x60] sm:$0xf] }
  0x72   : > { %v664_v48 = vmax.bf16 %v632_v34, %v600_v40  ;;  %v569_v50 = vld [vmem:[%s1507_s28 + $0x6c] sm:$0xf]  ;;  %v981_v52 = vmax.bf16 %v949_v36, %v917_v41  ;;  %v1014_v54 = vld [vmem:[%s1568_s2 + $0x60] sm:$0xf]  ;;  %v791_v55 = vmax.bf16 %v759_v39, %v727_v43  ;;  %v760_v56 = vld [vmem:[%s1528_s27 + $0x68] sm:$0xf] }
  0x73   : > { %v633_v51 = vld [vmem:[%s1513_s16 + $0x6c] sm:$0xf]  ;;  %v601_v57 = vmax.bf16 %v569_v50, %v537_v49  ;;  %1077 = vst.msk [vmem:[%s1598_s0 + $0x58] sm:$0xf] %vm1054_vm0, %v1044_v46  ;;  %v918_v58 = vmax.bf16 %v886_v42, %v854_v47  ;;  %v887_v59 = vld [vmem:[%s1551_s17 + $0x64] sm:$0xf] }
  0x74   : > { %v728_v60 = vmax.bf16 %v696_v45, %v664_v48  ;;  %v824_v61 = vld [vmem:[%s1537_s21 + $0x68] sm:$0xf]  ;;  %v697_v62 = vld [vmem:[%s1519_s23 + $0x6c] sm:$0xf]  ;;  %v1045_v63 = vmax.bf16 %v1013_v37, %v981_v52  ;;  %v855_v0 = vmax.bf16 %v823_v44, %v791_v55  ;;  %v538_v2 = vld [vmem:[%s1501_s25 + $0x70] sm:$0xf] }
  0x75   : > { %v665_v1 = vmax.bf16 %v633_v51, %v601_v57  ;;  %v570_v3 = vld [vmem:[%s1507_s28 + $0x70] sm:$0xf]  ;;  %v982_v5 = vmax.bf16 %v950_v53, %v918_v58  ;;  %v951_v6 = vld [vmem:[%s1562_s1 + $0x64] sm:$0xf]  ;;  %v761_v9 = vld [vmem:[%s1528_s27 + $0x6c] sm:$0xf] }
  0x76   : > { %v634_v4 = vld [vmem:[%s1513_s16 + $0x70] sm:$0xf]  ;;  %v1015_v7 = vld [vmem:[%s1568_s2 + $0x64] sm:$0xf]  ;;  %v792_v8 = vmax.bf16 %v760_v56, %v728_v60  ;;  %v602_v10 = vmax.bf16 %v570_v3, %v538_v2  ;;  %1078 = vst.msk [vmem:[%s1598_s0 + $0x5c] sm:$0xf] %vm1054_vm0, %v1045_v63  ;;  %v919_v11 = vmax.bf16 %v887_v59, %v855_v0 }
  0x77   : > { %v888_v12 = vld [vmem:[%s1551_s17 + $0x68] sm:$0xf]  ;;  %v729_v13 = vmax.bf16 %v697_v62, %v665_v1  ;;  %v825_v14 = vld [vmem:[%s1537_s21 + $0x6c] sm:$0xf]  ;;  %v698_v15 = vld [vmem:[%s1519_s23 + $0x70] sm:$0xf]  ;;  %v1046_v16 = vmax.bf16 %v1014_v54, %v982_v5 }
  0x78   : > { %v856_v17 = vmax.bf16 %v824_v61, %v792_v8  ;;  %v666_v18 = vmax.bf16 %v634_v4, %v602_v10  ;;  %v539_v19 = vld [vmem:[%s1501_s25 + $0x74] sm:$0xf]  ;;  %v983_v22 = vmax.bf16 %v951_v6, %v919_v11  ;;  %v952_v23 = vld [vmem:[%s1562_s1 + $0x68] sm:$0xf]  ;;  %v762_v26 = vld [vmem:[%s1528_s27 + $0x70] sm:$0xf] }
  0x79   : > { %v571_v20 = vld [vmem:[%s1507_s28 + $0x74] sm:$0xf]  ;;  %v1016_v24 = vld [vmem:[%s1568_s2 + $0x68] sm:$0xf]  ;;  %v793_v25 = vmax.bf16 %v761_v9, %v729_v13  ;;  %1079 = vst.msk [vmem:[%s1598_s0 + $0x60] sm:$0xf] %vm1054_vm0, %v1046_v16 }
  0x7a   : > { %v635_v21 = vld [vmem:[%s1513_s16 + $0x74] sm:$0xf]  ;;  %v603_v27 = vmax.bf16 %v571_v20, %v539_v19  ;;  %v920_v28 = vmax.bf16 %v888_v12, %v856_v17  ;;  %v889_v29 = vld [vmem:[%s1551_s17 + $0x6c] sm:$0xf]  ;;  %v730_v30 = vmax.bf16 %v698_v15, %v666_v18  ;;  %v826_v31 = vld [vmem:[%s1537_s21 + $0x70] sm:$0xf]  ;;  %v1047_v33 = vmax.bf16 %v1015_v7, %v983_v22 }
  0x7b   : > { %v699_v32 = vld [vmem:[%s1519_s23 + $0x74] sm:$0xf]  ;;  %v857_v34 = vmax.bf16 %v825_v14, %v793_v25  ;;  %v540_v36 = vld [vmem:[%s1501_s25 + $0x78] sm:$0xf]  ;;  %v953_v40 = vld [vmem:[%s1562_s1 + $0x6c] sm:$0xf] }
  0x7c   : > { %v667_v35 = vmax.bf16 %v635_v21, %v603_v27  ;;  %v572_v37 = vld [vmem:[%s1507_s28 + $0x78] sm:$0xf]  ;;  %v984_v39 = vmax.bf16 %v952_v23, %v920_v28  ;;  %v1017_v41 = vld [vmem:[%s1568_s2 + $0x6c] sm:$0xf]  ;;  %v794_v42 = vmax.bf16 %v762_v26, %v730_v30  ;;  %v763_v43 = vld [vmem:[%s1528_s27 + $0x74] sm:$0xf] }
  0x7d   : > { %v636_v38 = vld [vmem:[%s1513_s16 + $0x78] sm:$0xf]  ;;  %v604_v44 = vmax.bf16 %v572_v37, %v540_v36  ;;  %1080 = vst.msk [vmem:[%s1598_s0 + $0x64] sm:$0xf] %vm1054_vm0, %v1047_v33  ;;  %v921_v45 = vmax.bf16 %v889_v29, %v857_v34  ;;  %v890_v46 = vld [vmem:[%s1551_s17 + $0x70] sm:$0xf] }
  0x7e   : > { %v731_v47 = vmax.bf16 %v699_v32, %v667_v35  ;;  %v827_v48 = vld [vmem:[%s1537_s21 + $0x74] sm:$0xf]  ;;  %v700_v49 = vld [vmem:[%s1519_s23 + $0x78] sm:$0xf]  ;;  %v1048_v50 = vmax.bf16 %v1016_v24, %v984_v39  ;;  %v858_v51 = vmax.bf16 %v826_v31, %v794_v42  ;;  %v541_v53 = vld [vmem:[%s1501_s25 + $0x7c] sm:$0xf] }
  0x7f   : > { %v668_v52 = vmax.bf16 %v636_v38, %v604_v44  ;;  %v573_v54 = vld [vmem:[%s1507_s28 + $0x7c] sm:$0xf]  ;;  %v985_v56 = vmax.bf16 %v953_v40, %v921_v45  ;;  %v954_v57 = vld [vmem:[%s1562_s1 + $0x70] sm:$0xf]  ;;  %v764_v59 = vld [vmem:[%s1528_s27 + $0x78] sm:$0xf] }
  0x80   : > { %v637_v55 = vld [vmem:[%s1513_s16 + $0x7c] sm:$0xf]  ;;  %v795_v58 = vmax.bf16 %v763_v43, %v731_v47  ;;  %v605_v60 = vmax.bf16 %v573_v54, %v541_v53  ;;  %1081 = vst.msk [vmem:[%s1598_s0 + $0x68] sm:$0xf] %vm1054_vm0, %v1048_v50  ;;  %v922_v61 = vmax.bf16 %v890_v46, %v858_v51  ;;  %v891_v62 = vld [vmem:[%s1551_s17 + $0x74] sm:$0xf] }
  0x81   : > { %v732_v63 = vmax.bf16 %v700_v49, %v668_v52  ;;  %v701_v0 = vld [vmem:[%s1519_s23 + $0x7c] sm:$0xf]  ;;  %v1049_v1 = vmax.bf16 %v1017_v41, %v985_v56  ;;  %v1018_v2 = vld [vmem:[%s1568_s2 + $0x70] sm:$0xf]  ;;  %v828_v4 = vld [vmem:[%s1537_s21 + $0x78] sm:$0xf]  ;;  %s1914_s23 = scalar_lea.hbm %s1972_s9, %s1287_s22 }
  0x82   : > { %v859_v3 = vmax.bf16 %v827_v48, %v795_v58  ;;  %v669_v5 = vmax.bf16 %v637_v55, %v605_v60  ;;  %v986_v6 = vmax.bf16 %v954_v57, %v922_v61  ;;  %v955_v7 = vld [vmem:[%s1562_s1 + $0x74] sm:$0xf]  ;;  %v765_v9 = vld [vmem:[%s1528_s27 + $0x7c] sm:$0xf]  ;;  %v892_v11 = vld [vmem:[%s1551_s17 + $0x78] sm:$0xf] }
  0x83   : > { %v796_v8 = vmax.bf16 %v764_v59, %v732_v63  ;;  %1082 = vst.msk [vmem:[%s1598_s0 + $0x6c] sm:$0xf] %vm1054_vm0, %v1049_v1  ;;  %v1019_v14 = vld [vmem:[%s1568_s2 + $0x74] sm:$0xf]  ;;  %v829_v16 = vld [vmem:[%s1537_s21 + $0x7c] sm:$0xf] }
  0x84   : > { %v923_v10 = vmax.bf16 %v891_v62, %v859_v3  ;;  %v733_v12 = vmax.bf16 %v701_v0, %v669_v5  ;;  %v1050_v13 = vmax.bf16 %v1018_v2, %v986_v6  ;;  %v956_v18 = vld [vmem:[%s1562_s1 + $0x78] sm:$0xf]  ;;  %v893_v21 = vld [vmem:[%s1551_s17 + $0x7c] sm:$0xf]  ;;  %s1101_s25 = sshll.u32 %s1598_s0, 4  ;;  %s1393_s27 = smov [#allocation2]   ;;  %s1916_s25 = int_to_ptr.vmem [resolvable:$true] %s1101_s25 }
  0x85   : > { %v860_v15 = vmax.bf16 %v828_v4, %v796_v8  ;;  %v1020_v23 = vld [vmem:[%s1568_s2 + $0x78] sm:$0xf]  ;;  %v957_v26 = vld [vmem:[%s1562_s1 + $0x7c] sm:$0xf]  ;;  %s1982_s1 = sand.u32 1, %s1383_s10   ;;  %s1333_s29 = sshll.u32 %s1393_s27, 4  ;;  %s1334_s29 = int_to_ptr.vmem [resolvable:$false] %s1333_s29 }
  0x86   : > { %v987_v17 = vmax.bf16 %v955_v7, %v923_v10  ;;  %v797_v19 = vmax.bf16 %v765_v9, %v733_v12  ;;  %1083 = vst.msk [vmem:[%s1598_s0 + $0x70] sm:$0xf] %vm1054_vm0, %v1050_v13  ;;  %v1021_v29 = vld [vmem:[%s1568_s2 + $0x7c] sm:$0xf]  ;;  %s1922_s13 = scalar_lea.sflag [#allocation3], %s1982_s1  ;;  %s1329_s2 = scalar_lea.vmem %s1916_s25, 2048 }
  0x87   : > { %v924_v20 = vmax.bf16 %v892_v11, %v860_v15  ;;  %p1330_p11 = scmp.ne.s32.totalorder %s1916_s25, %s1329_s2  ;;  %s1335_s21 = scalar_lea.vmem %s1334_s29, 4096 }
  0x88   : > { %v1051_v22 = vmax.bf16 %v1019_v14, %v987_v17  ;;  %v861_v24 = vmax.bf16 %v829_v16, %v797_v19  ;;  %p1336_p0 = scmp.lt.s32.totalorder %s1916_s25, %s1334_s29  ;;  %p1337_p1 = scmp.lt.s32.totalorder %s1335_s21, %s1329_s2 }
  0x89   : > { %v988_v25 = vmax.bf16 %v956_v18, %v924_v20  ;;  %p1331_p12 = pnand %p1330_p11, %p1484_p5 }
  0x8a   : > { %1084 = vst.msk [vmem:[%s1598_s0 + $0x74] sm:$0xf] %vm1054_vm0, %v1051_v22  ;;  %v925_v27 = vmax.bf16 %v893_v21, %v861_v24  ;;  %p1338_p2 = por %p1337_p1, %p1336_p0 }
  0x8b   : > { %v1052_v28 = vmax.bf16 %v1020_v23, %v988_v25  ;;  %p1332_p13 = pneg %p1331_p12 }
  0x8c   : > { %v989_v30 = vmax.bf16 %v957_v26, %v925_v27 }
  0x8d   : > { %1085 = vst.msk [vmem:[%s1598_s0 + $0x78] sm:$0xf] %vm1054_vm0, %v1052_v28  ;;  %p1339_p3 = pnand %p1338_p2, %p1332_p13 }
  0x8e   : > { %v1053_v31 = vmax.bf16 %v1021_v29, %v989_v30 }
  0x90   : > { %1086 = vst.msk [vmem:[%s1598_s0 + $0x7c] sm:$0xf] %vm1054_vm0, %v1053_v31 }
  0x91   : > { %1342 = shalt.err (!%p1339_p3)
}
  0x92   : > { %s1343_s24 = scalar_lea.hbm %s1914_s23, 2048  ;;  %s1347_s14 = scalar_lea.hbm %s1972_s9, 4096 }
  0x93   : > { %p1344_p4 = scmp.ne.s32.totalorder %s1914_s23, %s1343_s24  ;;  %p1348_p9 = scmp.lt.u32.totalorder %s1914_s23, %s1972_s9 }
  0x94   : > { %p1349_p10 = scmp.lt.u32.totalorder %s1347_s14, %s1343_s24  ;;  %p1351_p12 = scmp.lt.u32.totalorder %s1343_s24, %s1914_s23 }
  0x95   : > { %p1345_p7 = pnand %p1344_p4, %p1484_p5 }
  0x96   : > { %p1350_p11 = por %p1349_p10, %p1348_p9 }
  0x97   : > { %p1346_p8 = pneg %p1345_p7 }
  0x98   : > { %p1352_p13 = por %p1351_p12, %p1350_p11 }
  0x9a   : > { %p1353_p0 = pnand %p1352_p13, %p1346_p8 }
  0x9c   : > { %1356 = shalt.err (!%p1353_p0)
}
  0x9d   : > { %s1394_s28 = smov 64   ;;  %s1395_s16 = smov 4  }
  0x9e   : > { %1288 = dma.vmem_to_hbm [thread:$0]  (%p1484_p5), %s1916_s25, 2048, %s1914_s23, %s1922_s13, %s1394_s28, %s1394_s28, %s1395_s16  }
  0x9f PF: > { %p1294_p1 = scmp.ge.s32.totalorder %s1391_s12, 2  ;;  %s1116_s1 = sand.u32 1, %s1379_s30  }
  0xa0   : > { %s1117_s2 = scalar_lea.sflag [#allocation3], %s1116_s1 }
  0xa1   : > { %p1291_p2 = pnand %p1294_p1, %p1488_p6 }
  0xa3   : > { %1374 = dma.done.wait (!%p1291_p2), %s1117_s2, 2048  }
  0xa4   : > { %1376 = vsyncadd (!%p1291_p2), %s1117_s2, 4294965248  ;;  %p19_p3 = scmp.ge.s32.totalorder %s1471_s15, 4   ;;  %s1983_s30 = smov %s1383_s10 }
  0xa5   : > { %s1984_s10 = smov %s1387_s11  ;;  %s1985_s11 = smov %s1482_s18 }
  0xa6   : > { %s1986_s12 = smov %s1471_s15  ;;  %21 = sbr.rel (!%p19_p3) target bundleno = 7 (0x7), region = 115 }
  0xad   :  { %1122 = vsyncpa [#allocation3], 1 }
  0xae   :  { %1124 = vsyncpa [#allocation3 + $0x1], 1 }

</bundles_post_ra>
